<compile_context>
chip_gen: v7x
topology: tpu7x:2x2x1
jax: 0.10.0
libtpu: 0.0.40
codegen_flags: <defaults>
</compile_context>

<pallas_src>
import functools

import jax
import jax.numpy as jnp
from jax.experimental import pallas as pl
from jax.experimental.pallas import tpu as pltpu


def _smear_rows_kernel(dist_ref, out_ref, *, coeff, start, step, g):
    # Module-faithful layout: dist_ref (TN, 1), out_ref (TN, G); G sits on lanes.
    lane = jax.lax.broadcasted_iota(jnp.int32, (1, g), 1).astype(jnp.float32)
    offset = start + step * lane                       # (1, G) compile-time linspace
    d = dist_ref[...] - offset                         # (TN,1)-(1,G) -> (TN,G)
    out_ref[...] = jnp.exp(coeff * (d * d)).astype(out_ref.dtype)


def _smear_lanes_kernel(dist_ref, out_ref, *, coeff, start, step, g):
    # Lane-dense layout: dist_ref (1, TN), out_ref (G, TN); N sits on lanes.
    sub = jax.lax.broadcasted_iota(jnp.int32, (g, 1), 0).astype(jnp.float32)
    offset = start + step * sub                        # (G, 1)
    d = dist_ref[...] - offset                         # (1,TN)-(G,1) -> (G,TN)
    out_ref[...] = jnp.exp(coeff * (d * d)).astype(out_ref.dtype)


def gaussian_smearing(dist, *, start=0.0, stop=5.0, num_gaussians=50,
                      tile_n=None, transposed=False, out_dtype=jnp.float32):
    """Gaussian smearing of pairwise distances.

    transposed=False (default): returns (dist.size, num_gaussians), identical to the
        PyTorch module's forward.
    transposed=True: returns (num_gaussians, dist.size) -- lane-dense layout for
        downstream consumers that can accept it (fastest on TPU).
    """
    dist_flat = dist.reshape(-1).astype(jnp.float32)
    n = dist_flat.shape[0]
    g = int(num_gaussians)

    # coeff/step from Python scalars (matches torch: offset[1]-offset[0]); g >= 2 assumed,
    # same failure mode as the PyTorch module for g == 1.
    step = (float(stop) - float(start)) / (g - 1)
    coeff = -0.5 / (step * step)

    itemsize = jnp.dtype(out_dtype).itemsize
    cost = pl.CostEstimate(flops=3 * n * g, transcendentals=n * g,
                           bytes_accessed=4 * n + n * g * itemsize)
    cparams = pltpu.CompilerParams(
        dimension_semantics=("parallel",),          # independent row tiles
        vmem_limit_bytes=48 * 1024 * 1024,          # headroom for the big-tile paths
    )
    kern_args = dict(coeff=coeff, start=float(start), step=step, g=g)

    if transposed:
        # Lane-dense: N on lanes.  Blocks: in (1, tile), out (G, tile).
        tile = 16384 if tile_n is None else int(tile_n)
        tile = int(min(tile, pl.cdiv(n, 128) * 128))      # multiple of 128 lanes
        dist_row = dist_flat.reshape(1, n)
        return pl.pallas_call(
            functools.partial(_smear_lanes_kernel, **kern_args),
            out_shape=jax.ShapeDtypeStruct((g, n), out_dtype),
            grid_spec=pltpu.PrefetchScalarGridSpec(
                num_scalar_prefetch=0,
                grid=(pl.cdiv(n, tile),),                  # ragged last block OK
                in_specs=[pl.BlockSpec((1, tile), lambda i: (0, i))],
                out_specs=pl.BlockSpec((g, tile), lambda i: (0, i)),
            ),
            compiler_params=cparams,
            cost_estimate=cost,
        )(dist_row)

    # Module-faithful: (N, G) output, G on lanes (masked stores accepted to keep the
    # exact PyTorch layout; use transposed=True for the fully lane-dense variant).
    tile = 8192 if tile_n is None else int(tile_n)
    tile = int(min(tile, pl.cdiv(n, 512) * 512))           # multiple of 8 sublanes
    dist_col = dist_flat.reshape(n, 1)
    return pl.pallas_call(
        functools.partial(_smear_rows_kernel, **kern_args),
        out_shape=jax.ShapeDtypeStruct((n, g), out_dtype),
        grid_spec=pltpu.PrefetchScalarGridSpec(
            num_scalar_prefetch=0,
            grid=(pl.cdiv(n, tile),),
            in_specs=[pl.BlockSpec((tile, 1), lambda i: (i, 0))],
            out_specs=pl.BlockSpec((tile, g), lambda i: (i, 0)),
        ),
        compiler_params=cparams,
        cost_estimate=cost,
    )(dist_col)


def gaussian_smearing_ref(dist, start, stop, num_gaussians):
    step = (float(stop) - float(start)) / (num_gaussians - 1)
    coeff = -0.5 / (step * step)
    offset = start + step * jnp.arange(num_gaussians, dtype=jnp.float32)
    d = dist.reshape(-1, 1).astype(jnp.float32) - offset.reshape(1, -1)
    return jnp.exp(coeff * d * d)


if __name__ == "__main__":
    start, stop, G = 0.0, 5.0, 50

    key = jax.random.PRNGKey(0)
    # Non-multiple-of-tile N to exercise the ragged (masked) last block.
    dist = jax.random.uniform(key, (777,), dtype=jnp.float32, minval=0.0, maxval=5.0)
    ref = gaussian_smearing_ref(dist, start, stop, G)

    # Module-faithful (N, G) path.
    out = jax.block_until_ready(
        gaussian_smearing(dist, start=start, stop=stop, num_gaussians=G))
    assert out.shape == (777, G)
    assert jnp.allclose(out, ref, atol=1e-6, rtol=1e-6)

    # Lane-dense (G, N) path.
    out_t = jax.block_until_ready(
        gaussian_smearing(dist, start=start, stop=stop, num_gaussians=G, transposed=True))
    assert out_t.shape == (G, 777)
    assert jnp.allclose(out_t, ref.T, atol=1e-6, rtol=1e-6)

    # Multi-step grids with a partial final block on both paths.
    out_s = jax.block_until_ready(gaussian_smearing(dist, num_gaussians=G, tile_n=256))
    assert jnp.allclose(out_s, ref, atol=1e-6, rtol=1e-6)
    out_ts = jax.block_until_ready(
        gaussian_smearing(dist, num_gaussians=G, tile_n=256, transposed=True))
    assert jnp.allclose(out_ts, ref.T, atol=1e-6, rtol=1e-6)

    # Optional bf16 store (exp in f32, cast at the store).
    out_bf = jax.block_until_ready(
        gaussian_smearing(dist, num_gaussians=G, transposed=True, out_dtype=jnp.bfloat16))
    assert jnp.allclose(out_bf.astype(jnp.float32), ref.T, atol=2e-2, rtol=2e-2)

    print("KERNEL_OK")
</pallas_src>

<mosaic_0001>
module attributes {stable_mosaic.version = 11 : i64} {
  func.func @_smear_rows_kernel(%arg0: i32, %arg1: memref<1024x1xf32, #tpu.memory_space<vmem>>, %arg2: memref<1024x50xf32, #tpu.memory_space<vmem>>) attributes {dimension_semantics = [#tpu.dimension_semantics<parallel>], iteration_bounds = array<i64: 1>, scalar_prefetch = 0 : i64, scratch_operands = 0 : i64, tpu.core_type = #tpu.core_type<tc>, window_params = [{transform_indices = @transform_0, window_bounds = array<i64: 1024, 1>}, {transform_indices = @transform_1, window_bounds = array<i64: 1024, 50>}]} {
    %0 = tpu.iota {dimensions = array<i32: 1>} : vector<1x50xi32>
    %1 = arith.sitofp %0 : vector<1x50xi32> to vector<1x50xf32>
    %cst = arith.constant 0.10204082 : f32
    %2 = vector.broadcast %cst : f32 to vector<1x50xf32>
    %3 = arith.mulf %2, %1 : vector<1x50xf32>
    %cst_0 = arith.constant 0.000000e+00 : f32
    %4 = vector.broadcast %cst_0 : f32 to vector<1x50xf32>
    %5 = arith.addf %4, %3 : vector<1x50xf32>
    %c0 = arith.constant 0 : index
    %c0_1 = arith.constant 0 : index
    %6 = vector.load %arg1[%c0, %c0_1] : memref<1024x1xf32, #tpu.memory_space<vmem>>, vector<1024x1xf32>
    %7 = vector.broadcast %6 : vector<1024x1xf32> to vector<1024x50xf32>
    %8 = vector.broadcast %5 : vector<1x50xf32> to vector<1024x50xf32>
    %9 = arith.subf %7, %8 : vector<1024x50xf32>
    %10 = arith.mulf %9, %9 : vector<1024x50xf32>
    %cst_2 = arith.constant -4.802000e+01 : f32
    %11 = vector.broadcast %cst_2 : f32 to vector<1024x50xf32>
    %12 = arith.mulf %11, %10 : vector<1024x50xf32>
    %13 = math.exp %12 : vector<1024x50xf32>
    %c0_3 = arith.constant 0 : index
    %c0_4 = arith.constant 0 : index
    %14 = vector.load %arg2[%c0_3, %c0_4] : memref<1024x50xf32, #tpu.memory_space<vmem>>, vector<1024x50xf32>
    tpu.vector_store %arg2[%c0_3, %c0_4], %13 {strides = array<i32>} : memref<1024x50xf32, #tpu.memory_space<vmem>>, vector<1024x50xf32>,
    return
  }
  func.func @transform_0(%arg0: i32) -> (i32, i32) {
    %c0_i32 = arith.constant 0 : i32
    %c0_i32_0 = arith.constant 0 : i32
    return %arg0, %c0_i32 : i32, i32
  }
  func.func @transform_1(%arg0: i32) -> (i32, i32) {
    %c0_i32 = arith.constant 0 : i32
    %c0_i32_0 = arith.constant 0 : i32
    return %arg0, %c0_i32 : i32, i32
  }
}

</mosaic_0001>

<bundles_post_ra>
// kernel: tpu_custom_call.1
= control target key start
LH: loop header
LB: loop body
LE: loop exit
PB: predicated region body
PF: predicated region fallthrough
CT: control target
= control target key end

     0   :  { %v2237_v2 = vmov 0   ;;  %v8_v59 = vlaneseq  ;;  %vm1421_vm0 = vcmask 408576   ;;  %s3154_s0 = inlined_call_operand.vmem [shape: f32[777,1], index: 0, kind: input, shape index: {}]   ;;  %s3155_s1 = inlined_call_operand.vmem [shape: f32[777,50], index: 1, kind: output, shape index: {}]  }
   0x1   :  { %v15_v0 = vld [vmem:[%s3154_s0 + $0x10] sm:$0xff]  ;;  %v13_v1 = vld [vmem:[%s3154_s0] sm:$0xff]  ;;  %1980 = vset.pattern.permute.xlu1 %v2237_v2  ;;  %1979 = vset.pattern.permute.xlu0 %v2237_v2  ;;  %v16_v3 = vld [vmem:[%s3154_s0 + $0x18] sm:$0xff] }
   0x2   :  { %153 = vperm.xlu1 %1980, %v15_v0   ;;  %143 = vperm.xlu0 %1979, %v13_v1   ;;  %v14_v4 = vld [vmem:[%s3154_s0 + $0x8] sm:$0xff]  ;;  %v17_v6 = vld [vmem:[%s3154_s0 + $0x20] sm:$0xff]  ;;  %v20_v7 = vld [vmem:[%s3154_s0 + $0x38] sm:$0xff]  ;;  %v9_v62 = vand.u32 127, %v8_v59 }
   0x3   :  { %v18_v5 = vld [vmem:[%s3154_s0 + $0x28] sm:$0xff]  ;;  %v19_v8 = vld [vmem:[%s3154_s0 + $0x30] sm:$0xff]  ;;  %v21_v10 = vld [vmem:[%s3154_s0 + $0x40] sm:$0xff] }
   0x4   :  { %v22_v9 = vld [vmem:[%s3154_s0 + $0x48] sm:$0xff]  ;;  %v24_v11 = vld [vmem:[%s3154_s0 + $0x58] sm:$0xff]  ;;  %v23_v12 = vld [vmem:[%s3154_s0 + $0x50] sm:$0xff]  ;;  %v10_v1 = vcvt.s32.f32 %v9_v62 }
   0x5   :  { %v26_v13 = vld [vmem:[%s3154_s0 + $0x68] sm:$0xff]  ;;  %v25_v14 = vld [vmem:[%s3154_s0 + $0x60] sm:$0xff]  ;;  %v28_v15 = vld [vmem:[%s3154_s0 + $0x78] sm:$0xff] }
   0x6   :  { %158 = vperm.xlu1 %1980, %v16_v3   ;;  %148 = vperm.xlu0 %1979, %v14_v4   ;;  %v27_v16 = vld [vmem:[%s3154_s0 + $0x70] sm:$0xff]  ;;  %v30_v17 = vld [vmem:[%s3154_s0 + $0x88] sm:$0xff]  ;;  %v29_v18 = vld [vmem:[%s3154_s0 + $0x80] sm:$0xff]  ;;  %v2440_v4 = vmul.f32 0.10204082, %v10_v1 }
   0x7   :  { %v32_v19 = vld [vmem:[%s3154_s0 + $0x98] sm:$0xff]  ;;  %v31_v20 = vld [vmem:[%s3154_s0 + $0x90] sm:$0xff]  ;;  %v34_v21 = vld [vmem:[%s3154_s0 + $0xa8] sm:$0xff] }
   0x8   :  { %v33_v22 = vld [vmem:[%s3154_s0 + $0xa0] sm:$0xff]  ;;  %v36_v23 = vld [vmem:[%s3154_s0 + $0xb8] sm:$0xff]  ;;  %v35_v24 = vld [vmem:[%s3154_s0 + $0xb0] sm:$0xff] }
   0x9   :  { %v38_v25 = vld [vmem:[%s3154_s0 + $0xc8] sm:$0xff]  ;;  %v37_v26 = vld [vmem:[%s3154_s0 + $0xc0] sm:$0xff]  ;;  %v40_v27 = vld [vmem:[%s3154_s0 + $0xd8] sm:$0xff] }
   0xa   :  { %168 = vperm.xlu1 %1980, %v18_v5   ;;  %163 = vperm.xlu0 %1979, %v17_v6   ;;  %v39_v28 = vld [vmem:[%s3154_s0 + $0xd0] sm:$0xff]  ;;  %v42_v29 = vld [vmem:[%s3154_s0 + $0xe8] sm:$0xff]  ;;  %v41_v30 = vld [vmem:[%s3154_s0 + $0xe0] sm:$0xff] }
   0xb   :  { %v44_v31 = vld [vmem:[%s3154_s0 + $0xf8] sm:$0xff]  ;;  %v43_v32 = vld [vmem:[%s3154_s0 + $0xf0] sm:$0xff]  ;;  %v46_v33 = vld [vmem:[%s3154_s0 + $0x108] sm:$0xff] }
   0xc   :  { %v45_v34 = vld [vmem:[%s3154_s0 + $0x100] sm:$0xff]  ;;  %v48_v35 = vld [vmem:[%s3154_s0 + $0x118] sm:$0xff]  ;;  %v47_v36 = vld [vmem:[%s3154_s0 + $0x110] sm:$0xff] }
   0xd   :  { %v50_v37 = vld [vmem:[%s3154_s0 + $0x128] sm:$0xff]  ;;  %v49_v38 = vld [vmem:[%s3154_s0 + $0x120] sm:$0xff]  ;;  %v52_v39 = vld [vmem:[%s3154_s0 + $0x138] sm:$0xff] }
   0xe   :  { %178 = vperm.xlu1 %1980, %v20_v7   ;;  %173 = vperm.xlu0 %1979, %v19_v8   ;;  %v51_v40 = vld [vmem:[%s3154_s0 + $0x130] sm:$0xff]  ;;  %v54_v41 = vld [vmem:[%s3154_s0 + $0x148] sm:$0xff]  ;;  %v53_v42 = vld [vmem:[%s3154_s0 + $0x140] sm:$0xff] }
   0xf   :  { %v56_v43 = vld [vmem:[%s3154_s0 + $0x158] sm:$0xff]  ;;  %v55_v44 = vld [vmem:[%s3154_s0 + $0x150] sm:$0xff]  ;;  %v58_v45 = vld [vmem:[%s3154_s0 + $0x168] sm:$0xff] }
  0x10   :  { %v57_v46 = vld [vmem:[%s3154_s0 + $0x160] sm:$0xff]  ;;  %v60_v47 = vld [vmem:[%s3154_s0 + $0x178] sm:$0xff]  ;;  %v59_v48 = vld [vmem:[%s3154_s0 + $0x170] sm:$0xff] }
  0x11   :  { %v62_v49 = vld [vmem:[%s3154_s0 + $0x188] sm:$0xff]  ;;  %v61_v50 = vld [vmem:[%s3154_s0 + $0x180] sm:$0xff]  ;;  %v64_v51 = vld [vmem:[%s3154_s0 + $0x198] sm:$0xff] }
  0x12   :  { %188 = vperm.xlu1 %1980, %v22_v9   ;;  %183 = vperm.xlu0 %1979, %v21_v10   ;;  %v63_v52 = vld [vmem:[%s3154_s0 + $0x190] sm:$0xff]  ;;  %v66_v53 = vld [vmem:[%s3154_s0 + $0x1a8] sm:$0xff]  ;;  %v65_v54 = vld [vmem:[%s3154_s0 + $0x1a0] sm:$0xff] }
  0x13   :  { %v68_v55 = vld [vmem:[%s3154_s0 + $0x1b8] sm:$0xff]  ;;  %v67_v56 = vld [vmem:[%s3154_s0 + $0x1b0] sm:$0xff]  ;;  %v70_v57 = vld [vmem:[%s3154_s0 + $0x1c8] sm:$0xff] }
  0x14   :  { %v69_v58 = vld [vmem:[%s3154_s0 + $0x1c0] sm:$0xff]  ;;  %v72_v60 = vld [vmem:[%s3154_s0 + $0x1d8] sm:$0xff]  ;;  %v71_v61 = vld [vmem:[%s3154_s0 + $0x1d0] sm:$0xff] }
  0x15   :  { %v74_v63 = vld [vmem:[%s3154_s0 + $0x1e8] sm:$0xff]  ;;  %v73_v0 = vld [vmem:[%s3154_s0 + $0x1e0] sm:$0xff]  ;;  %v76_v2 = vld [vmem:[%s3154_s0 + $0x1f8] sm:$0xff] }
  0x16   :  { %198 = vperm.xlu1 %1980, %v24_v11   ;;  %193 = vperm.xlu0 %1979, %v23_v12   ;;  %v75_v3 = vld [vmem:[%s3154_s0 + $0x1f0] sm:$0xff]  ;;  %v78_v5 = vld [vmem:[%s3154_s0 + $0x208] sm:$0xff]  ;;  %v77_v6 = vld [vmem:[%s3154_s0 + $0x200] sm:$0xff] }
  0x17   :  { %v80_v11 = vld [vmem:[%s3154_s0 + $0x218] sm:$0xff]  ;;  %v79_v12 = vld [vmem:[%s3154_s0 + $0x210] sm:$0xff] }
  0x1a   :  { %208 = vperm.xlu1 %1980, %v26_v13   ;;  %203 = vperm.xlu0 %1979, %v25_v14  }
  0x1e   :  { %218 = vperm.xlu1 %1980, %v28_v15   ;;  %213 = vperm.xlu0 %1979, %v27_v16  }
  0x22   :  { %228 = vperm.xlu1 %1980, %v30_v17   ;;  %223 = vperm.xlu0 %1979, %v29_v18  }
  0x26   :  { %238 = vperm.xlu1 %1980, %v32_v19   ;;  %233 = vperm.xlu0 %1979, %v31_v20  }
  0x2a   :  { %248 = vperm.xlu1 %1980, %v34_v21   ;;  %243 = vperm.xlu0 %1979, %v33_v22   ;;  %v82_v21 = vld [vmem:[%s3154_s0 + $0x228] sm:$0xff]  ;;  %v81_v22 = vld [vmem:[%s3154_s0 + $0x220] sm:$0xff] }
  0x2e   :  { %258 = vperm.xlu1 %1980, %v36_v23   ;;  %253 = vperm.xlu0 %1979, %v35_v24  }
  0x32   :  { %268 = vperm.xlu1 %1980, %v38_v25   ;;  %263 = vperm.xlu0 %1979, %v37_v26  }
  0x36   :  { %278 = vperm.xlu1 %1980, %v40_v27   ;;  %273 = vperm.xlu0 %1979, %v39_v28  }
  0x3a   :  { %288 = vperm.xlu1 %1980, %v42_v29   ;;  %283 = vperm.xlu0 %1979, %v41_v30  }
  0x3e   :  { %298 = vperm.xlu1 %1980, %v44_v31   ;;  %293 = vperm.xlu0 %1979, %v43_v32  }
  0x42   :  { %308 = vperm.xlu1 %1980, %v46_v33   ;;  %303 = vperm.xlu0 %1979, %v45_v34   ;;  %v84_v33 = vld [vmem:[%s3154_s0 + $0x238] sm:$0xff]  ;;  %v83_v34 = vld [vmem:[%s3154_s0 + $0x230] sm:$0xff] }
  0x46   :  { %318 = vperm.xlu1 %1980, %v48_v35   ;;  %313 = vperm.xlu0 %1979, %v47_v36  }
  0x4a   :  { %328 = vperm.xlu1 %1980, %v50_v37   ;;  %323 = vperm.xlu0 %1979, %v49_v38  }
  0x4e   :  { %338 = vperm.xlu1 %1980, %v52_v39   ;;  %333 = vperm.xlu0 %1979, %v51_v40  }
  0x52   :  { %348 = vperm.xlu1 %1980, %v54_v41   ;;  %343 = vperm.xlu0 %1979, %v53_v42  }
  0x56   :  { %358 = vperm.xlu1 %1980, %v56_v43   ;;  %353 = vperm.xlu0 %1979, %v55_v44  }
  0x5a   :  { %368 = vperm.xlu1 %1980, %v58_v45   ;;  %363 = vperm.xlu0 %1979, %v57_v46   ;;  %v86_v45 = vld [vmem:[%s3154_s0 + $0x248] sm:$0xff]  ;;  %v85_v46 = vld [vmem:[%s3154_s0 + $0x240] sm:$0xff] }
  0x5e   :  { %378 = vperm.xlu1 %1980, %v60_v47   ;;  %373 = vperm.xlu0 %1979, %v59_v48  }
  0x62   :  { %388 = vperm.xlu1 %1980, %v62_v49   ;;  %383 = vperm.xlu0 %1979, %v61_v50  }
  0x66   :  { %398 = vperm.xlu1 %1980, %v64_v51   ;;  %393 = vperm.xlu0 %1979, %v63_v52  }
  0x6a   :  { %408 = vperm.xlu1 %1980, %v66_v53   ;;  %403 = vperm.xlu0 %1979, %v65_v54  }
  0x6e   :  { %418 = vperm.xlu1 %1980, %v68_v55   ;;  %413 = vperm.xlu0 %1979, %v67_v56  }
  0x72   :  { %428 = vperm.xlu1 %1980, %v70_v57   ;;  %423 = vperm.xlu0 %1979, %v69_v58   ;;  %v88_v57 = vld [vmem:[%s3154_s0 + $0x258] sm:$0xff]  ;;  %v87_v58 = vld [vmem:[%s3154_s0 + $0x250] sm:$0xff] }
  0x76   :  { %438 = vperm.xlu1 %1980, %v72_v60   ;;  %433 = vperm.xlu0 %1979, %v71_v61  }
  0x7a   :  { %448 = vperm.xlu1 %1980, %v74_v63   ;;  %443 = vperm.xlu0 %1979, %v73_v0  }
  0x7e   :  { %458 = vperm.xlu1 %1980, %v76_v2   ;;  %453 = vperm.xlu0 %1979, %v75_v3  }
  0x81   :  { %v154_v7 = vpop.permute.xlu1 %153  ;;  %v144_v8 = vpop.permute.xlu0 %143 }
  0x82   :  { %v783_v9 = vsub.f32 %v154_v7, %v2440_v4  ;;  %v781_v10 = vsub.f32 %v144_v8, %v2440_v4  ;;  %468 = vperm.xlu1 %1980, %v78_v5   ;;  %463 = vperm.xlu0 %1979, %v77_v6   ;;  %v90_v8 = vld [vmem:[%s3154_s0 + $0x268] sm:$0xff] }
  0x84   :  { %v911_v13 = vmul.f32 %v783_v9, %v783_v9  ;;  %v909_v14 = vmul.f32 %v781_v10, %v781_v10  ;;  %v89_v9 = vld [vmem:[%s3154_s0 + $0x260] sm:$0xff] }
  0x85   :  { %v159_v15 = vpop.permute.xlu1 %158  ;;  %v149_v16 = vpop.permute.xlu0 %148 }
  0x86   :  { %v1039_v17 = vmul.f32 -48.02, %v911_v13  ;;  %v1037_v18 = vmul.f32 -48.02, %v909_v14  ;;  %v784_v19 = vsub.f32 %v159_v15, %v2440_v4  ;;  %v782_v20 = vsub.f32 %v149_v16, %v2440_v4  ;;  %478 = vperm.xlu1 %1980, %v80_v11   ;;  %473 = vperm.xlu0 %1979, %v79_v12  }
  0x88   :  { %v1169_v23 = vmul.f32 1.442695, %v1039_v17  ;;  %v1165_v24 = vmul.f32 1.442695, %v1037_v18  ;;  %v912_v25 = vmul.f32 %v784_v19, %v784_v19  ;;  %v910_v26 = vmul.f32 %v782_v20, %v782_v20 }
  0x89   :  { %v169_v27 = vpop.permute.xlu1 %168  ;;  %v164_v28 = vpop.permute.xlu0 %163 }
  0x8a   :  { %1981 = vpow2.f32 %v1169_v23  ;;  %v1040_v29 = vmul.f32 -48.02, %v912_v25  ;;  %v1038_v30 = vmul.f32 -48.02, %v910_v26  ;;  %v786_v31 = vsub.f32 %v169_v27, %v2440_v4  ;;  %488 = vperm.xlu1 %1980, %v82_v21   ;;  %483 = vperm.xlu0 %1979, %v81_v22   ;;  %v92_v22 = vld [vmem:[%s3154_s0 + $0x278] sm:$0xff]  ;;  %v91_v23 = vld [vmem:[%s3154_s0 + $0x270] sm:$0xff] }
  0x8b   :  { %1983 = vpow2.f32 %v1165_v24  ;;  %v785_v32 = vsub.f32 %v164_v28, %v2440_v4 }
  0x8c   :  { %v1171_v35 = vmul.f32 1.442695, %v1040_v29  ;;  %v1167_v36 = vmul.f32 1.442695, %v1038_v30  ;;  %v914_v37 = vmul.f32 %v786_v31, %v786_v31 }
  0x8d   :  { %v913_v38 = vmul.f32 %v785_v32, %v785_v32  ;;  %v179_v39 = vpop.permute.xlu1 %178  ;;  %v174_v40 = vpop.permute.xlu0 %173 }
  0x8e   :  { %1985 = vpow2.f32 %v1171_v35  ;;  %v1042_v41 = vmul.f32 -48.02, %v914_v37  ;;  %v788_v42 = vsub.f32 %v179_v39, %v2440_v4  ;;  %v787_v43 = vsub.f32 %v174_v40, %v2440_v4  ;;  %498 = vperm.xlu1 %1980, %v84_v33   ;;  %493 = vperm.xlu0 %1979, %v83_v34   ;;  %v93_v39 = vld [vmem:[%s3154_s0 + $0x280] sm:$0xff] }
  0x8f   :  { %1987 = vpow2.f32 %v1167_v36  ;;  %v1041_v44 = vmul.f32 -48.02, %v913_v38  ;;  %v94_v38 = vld [vmem:[%s3154_s0 + $0x288] sm:$0xff] }
  0x90   :  { %v1175_v47 = vmul.f32 1.442695, %v1042_v41  ;;  %v916_v48 = vmul.f32 %v788_v42, %v788_v42  ;;  %v915_v49 = vmul.f32 %v787_v43, %v787_v43 }
  0x91   :  { %v1173_v50 = vmul.f32 1.442695, %v1041_v44  ;;  %v189_v51 = vpop.permute.xlu1 %188  ;;  %v184_v52 = vpop.permute.xlu0 %183 }
  0x92   :  { %1989 = vpow2.f32 %v1175_v47  ;;  %v1044_v53 = vmul.f32 -48.02, %v916_v48  ;;  %v1043_v54 = vmul.f32 -48.02, %v915_v49  ;;  %v790_v55 = vsub.f32 %v189_v51, %v2440_v4  ;;  %508 = vperm.xlu1 %1980, %v86_v45   ;;  %503 = vperm.xlu0 %1979, %v85_v46  }
  0x93   :  { %1991 = vpow2.f32 %v1173_v50  ;;  %v789_v56 = vsub.f32 %v184_v52, %v2440_v4 }
  0x94   :  { %v1982_v59 = vpop.eup %1981  ;;  %v1179_v60 = vmul.f32 1.442695, %v1044_v53  ;;  %v1177_v61 = vmul.f32 1.442695, %v1043_v54  ;;  %v918_v62 = vmul.f32 %v790_v55, %v790_v55  ;;  %v96_v54 = vld [vmem:[%s3154_s0 + $0x298] sm:$0xff]  ;;  %v95_v55 = vld [vmem:[%s3154_s0 + $0x290] sm:$0xff] }
  0x95   :  { %v1984_v63 = vpop.eup %1983  ;;  %1424 = vst.msk [vmem:[#allocation2 + $0x10] sm:$0xff] %vm1421_vm0, %v1982_v59  ;;  %v917_v0 = vmul.f32 %v789_v56, %v789_v56  ;;  %v199_v1 = vpop.permute.xlu1 %198 }
  0x96   :  { %v194_v2 = vpop.permute.xlu0 %193  ;;  %1422 = vst.msk [vmem:[#allocation2] sm:$0xff] %vm1421_vm0, %v1984_v63  ;;  %1993 = vpow2.f32 %v1179_v60  ;;  %v1046_v3 = vmul.f32 -48.02, %v918_v62  ;;  %v792_v5 = vsub.f32 %v199_v1, %v2440_v4  ;;  %518 = vperm.xlu1 %1980, %v88_v57   ;;  %513 = vperm.xlu0 %1979, %v87_v58  }
  0x97   :  { %v791_v6 = vsub.f32 %v194_v2, %v2440_v4  ;;  %1995 = vpow2.f32 %v1177_v61  ;;  %v1045_v7 = vmul.f32 -48.02, %v917_v0 }
  0x98   :  { %v1986_v10 = vpop.eup %1985  ;;  %v1183_v11 = vmul.f32 1.442695, %v1046_v3  ;;  %v920_v12 = vmul.f32 %v792_v5, %v792_v5 }
  0x99   :  { %v919_v13 = vmul.f32 %v791_v6, %v791_v6  ;;  %v1988_v14 = vpop.eup %1987  ;;  %1425 = vst.msk [vmem:[#allocation2 + $0x18] sm:$0xff] %vm1421_vm0, %v1986_v10  ;;  %v1181_v15 = vmul.f32 1.442695, %v1045_v7  ;;  %v209_v16 = vpop.permute.xlu1 %208  ;;  %v98_v7 = vld [vmem:[%s3154_s0 + $0x2a8] sm:$0xff] }
  0x9a   :  { %v204_v17 = vpop.permute.xlu0 %203  ;;  %1423 = vst.msk [vmem:[#allocation2 + $0x8] sm:$0xff] %vm1421_vm0, %v1988_v14  ;;  %1997 = vpow2.f32 %v1183_v11  ;;  %v1048_v18 = vmul.f32 -48.02, %v920_v12  ;;  %v794_v20 = vsub.f32 %v209_v16, %v2440_v4  ;;  %528 = vperm.xlu1 %1980, %v90_v8   ;;  %523 = vperm.xlu0 %1979, %v89_v9   ;;  %v97_v8 = vld [vmem:[%s3154_s0 + $0x2a0] sm:$0xff] }
  0x9b   :  { %v1047_v19 = vmul.f32 -48.02, %v919_v13  ;;  %1999 = vpow2.f32 %v1181_v15  ;;  %v793_v21 = vsub.f32 %v204_v17, %v2440_v4 }
  0x9c   :  { %v1990_v24 = vpop.eup %1989  ;;  %v1777_v25 = vld [vmem:[#allocation2 + $0x10] sm:$0xff]  ;;  %v1187_v26 = vmul.f32 1.442695, %v1048_v18  ;;  %v922_v28 = vmul.f32 %v794_v20, %v794_v20 }
  0x9d   :  { %v1185_v27 = vmul.f32 1.442695, %v1047_v19  ;;  %v1992_v29 = vpop.eup %1991  ;;  %1778 = vst [vmem:[%s3155_s1 + $0x10] sm:$0xff] %v1777_v25  ;;  %v1773_v30 = vld [vmem:[#allocation2] sm:$0xff]  ;;  %1427 = vst.msk [vmem:[#allocation2 + $0x28] sm:$0xff] %vm1421_vm0, %v1990_v24  ;;  %v921_v31 = vmul.f32 %v793_v21, %v793_v21  ;;  %v219_v32 = vpop.permute.xlu1 %218  ;;  %v99_v24 = vld [vmem:[%s3154_s0 + $0x2b0] sm:$0xff] }
  0x9e   :  { %v214_v33 = vpop.permute.xlu0 %213  ;;  %1774 = vst [vmem:[%s3155_s1] sm:$0xff] %v1773_v30  ;;  %1426 = vst.msk [vmem:[#allocation2 + $0x20] sm:$0xff] %vm1421_vm0, %v1992_v29  ;;  %2001 = vpow2.f32 %v1187_v26  ;;  %v1050_v34 = vmul.f32 -48.02, %v922_v28  ;;  %v796_v35 = vsub.f32 %v219_v32, %v2440_v4  ;;  %538 = vperm.xlu1 %1980, %v92_v22   ;;  %533 = vperm.xlu0 %1979, %v91_v23   ;;  %v100_v23 = vld [vmem:[%s3154_s0 + $0x2b8] sm:$0xff] }
  0x9f   :  { %v795_v36 = vsub.f32 %v214_v33, %v2440_v4  ;;  %2003 = vpow2.f32 %v1185_v27  ;;  %v1049_v37 = vmul.f32 -48.02, %v921_v31 }
  0xa0   :  { %v1994_v40 = vpop.eup %1993  ;;  %v1779_v41 = vld [vmem:[#allocation2 + $0x18] sm:$0xff]  ;;  %v1191_v42 = vmul.f32 1.442695, %v1050_v34  ;;  %v924_v43 = vmul.f32 %v796_v35, %v796_v35 }
  0xa1   :  { %v923_v44 = vmul.f32 %v795_v36, %v795_v36  ;;  %v1996_v45 = vpop.eup %1995  ;;  %1780 = vst [vmem:[%s3155_s1 + $0x18] sm:$0xff] %v1779_v41  ;;  %v1775_v46 = vld [vmem:[#allocation2 + $0x8] sm:$0xff]  ;;  %1429 = vst.msk [vmem:[#allocation2 + $0x38] sm:$0xff] %vm1421_vm0, %v1994_v40  ;;  %v1189_v47 = vmul.f32 1.442695, %v1049_v37  ;;  %v229_v48 = vpop.permute.xlu1 %228  ;;  %v101_v40 = vld [vmem:[%s3154_s0 + $0x2c0] sm:$0xff] }
  0xa2   :  { %v224_v49 = vpop.permute.xlu0 %223  ;;  %1776 = vst [vmem:[%s3155_s1 + $0x8] sm:$0xff] %v1775_v46  ;;  %1428 = vst.msk [vmem:[#allocation2 + $0x30] sm:$0xff] %vm1421_vm0, %v1996_v45  ;;  %2005 = vpow2.f32 %v1191_v42  ;;  %v1052_v50 = vmul.f32 -48.02, %v924_v43  ;;  %v798_v52 = vsub.f32 %v229_v48, %v2440_v4  ;;  %548 = vperm.xlu1 %1980, %v94_v38   ;;  %543 = vperm.xlu0 %1979, %v93_v39   ;;  %v102_v39 = vld [vmem:[%s3154_s0 + $0x2c8] sm:$0xff] }
  0xa3   :  { %v1051_v51 = vmul.f32 -48.02, %v923_v44  ;;  %2007 = vpow2.f32 %v1189_v47  ;;  %v797_v53 = vsub.f32 %v224_v49, %v2440_v4 }
  0xa4   :  { %v1998_v56 = vpop.eup %1997  ;;  %v1783_v57 = vld [vmem:[#allocation2 + $0x28] sm:$0xff]  ;;  %v1195_v58 = vmul.f32 1.442695, %v1052_v50  ;;  %v926_v60 = vmul.f32 %v798_v52, %v798_v52 }
  0xa5   :  { %v1193_v59 = vmul.f32 1.442695, %v1051_v51  ;;  %v2000_v61 = vpop.eup %1999  ;;  %1784 = vst [vmem:[%s3155_s1 + $0x28] sm:$0xff] %v1783_v57  ;;  %v1781_v62 = vld [vmem:[#allocation2 + $0x20] sm:$0xff]  ;;  %1431 = vst.msk [vmem:[#allocation2 + $0x48] sm:$0xff] %vm1421_vm0, %v1998_v56  ;;  %v925_v63 = vmul.f32 %v797_v53, %v797_v53  ;;  %v239_v0 = vpop.permute.xlu1 %238  ;;  %v103_v56 = vld [vmem:[%s3154_s0 + $0x2d0] sm:$0xff] }
  0xa6   :  { %v234_v1 = vpop.permute.xlu0 %233  ;;  %1782 = vst [vmem:[%s3155_s1 + $0x20] sm:$0xff] %v1781_v62  ;;  %1430 = vst.msk [vmem:[#allocation2 + $0x40] sm:$0xff] %vm1421_vm0, %v2000_v61  ;;  %2009 = vpow2.f32 %v1195_v58  ;;  %v1054_v2 = vmul.f32 -48.02, %v926_v60  ;;  %v800_v3 = vsub.f32 %v239_v0, %v2440_v4  ;;  %558 = vperm.xlu1 %1980, %v96_v54   ;;  %553 = vperm.xlu0 %1979, %v95_v55   ;;  %v104_v55 = vld [vmem:[%s3154_s0 + $0x2d8] sm:$0xff] }
  0xa7   :  { %v799_v5 = vsub.f32 %v234_v1, %v2440_v4  ;;  %2011 = vpow2.f32 %v1193_v59  ;;  %v1053_v6 = vmul.f32 -48.02, %v925_v63 }
  0xa8   :  { %v2002_v9 = vpop.eup %2001  ;;  %v1787_v10 = vld [vmem:[#allocation2 + $0x38] sm:$0xff]  ;;  %v1199_v11 = vmul.f32 1.442695, %v1054_v2  ;;  %v928_v12 = vmul.f32 %v800_v3, %v800_v3 }
  0xa9   :  { %v927_v13 = vmul.f32 %v799_v5, %v799_v5  ;;  %v2004_v14 = vpop.eup %2003  ;;  %1788 = vst [vmem:[%s3155_s1 + $0x38] sm:$0xff] %v1787_v10  ;;  %v1785_v15 = vld [vmem:[#allocation2 + $0x30] sm:$0xff]  ;;  %1433 = vst.msk [vmem:[#allocation2 + $0x58] sm:$0xff] %vm1421_vm0, %v2002_v9  ;;  %v1197_v16 = vmul.f32 1.442695, %v1053_v6  ;;  %v249_v17 = vpop.permute.xlu1 %248  ;;  %v105_v9 = vld [vmem:[%s3154_s0 + $0x2e0] sm:$0xff] }
  0xaa   :  { %v244_v18 = vpop.permute.xlu0 %243  ;;  %1786 = vst [vmem:[%s3155_s1 + $0x30] sm:$0xff] %v1785_v15  ;;  %1432 = vst.msk [vmem:[#allocation2 + $0x50] sm:$0xff] %vm1421_vm0, %v2004_v14  ;;  %2013 = vpow2.f32 %v1199_v11  ;;  %v1056_v19 = vmul.f32 -48.02, %v928_v12  ;;  %v802_v21 = vsub.f32 %v249_v17, %v2440_v4  ;;  %568 = vperm.xlu1 %1980, %v98_v7   ;;  %563 = vperm.xlu0 %1979, %v97_v8   ;;  %v106_v8 = vld [vmem:[%s3154_s0 + $0x2e8] sm:$0xff] }
  0xab   :  { %v1055_v20 = vmul.f32 -48.02, %v927_v13  ;;  %2015 = vpow2.f32 %v1197_v16  ;;  %v801_v22 = vsub.f32 %v244_v18, %v2440_v4 }
  0xac   :  { %v2006_v25 = vpop.eup %2005  ;;  %v1791_v26 = vld [vmem:[#allocation2 + $0x48] sm:$0xff]  ;;  %v1203_v27 = vmul.f32 1.442695, %v1056_v19  ;;  %v930_v29 = vmul.f32 %v802_v21, %v802_v21 }
  0xad   :  { %v1201_v28 = vmul.f32 1.442695, %v1055_v20  ;;  %v2008_v30 = vpop.eup %2007  ;;  %1792 = vst [vmem:[%s3155_s1 + $0x48] sm:$0xff] %v1791_v26  ;;  %v1789_v31 = vld [vmem:[#allocation2 + $0x40] sm:$0xff]  ;;  %1435 = vst.msk [vmem:[#allocation2 + $0x68] sm:$0xff] %vm1421_vm0, %v2006_v25  ;;  %v929_v32 = vmul.f32 %v801_v22, %v801_v22  ;;  %v259_v33 = vpop.permute.xlu1 %258  ;;  %v107_v25 = vld [vmem:[%s3154_s0 + $0x2f0] sm:$0xff] }
  0xae   :  { %v254_v34 = vpop.permute.xlu0 %253  ;;  %1790 = vst [vmem:[%s3155_s1 + $0x40] sm:$0xff] %v1789_v31  ;;  %1434 = vst.msk [vmem:[#allocation2 + $0x60] sm:$0xff] %vm1421_vm0, %v2008_v30  ;;  %2017 = vpow2.f32 %v1203_v27  ;;  %v1058_v35 = vmul.f32 -48.02, %v930_v29  ;;  %v804_v36 = vsub.f32 %v259_v33, %v2440_v4  ;;  %578 = vperm.xlu1 %1980, %v100_v23   ;;  %573 = vperm.xlu0 %1979, %v99_v24   ;;  %v108_v24 = vld [vmem:[%s3154_s0 + $0x2f8] sm:$0xff] }
  0xaf   :  { %v803_v37 = vsub.f32 %v254_v34, %v2440_v4  ;;  %2019 = vpow2.f32 %v1201_v28  ;;  %v1057_v38 = vmul.f32 -48.02, %v929_v32 }
  0xb0   :  { %v2010_v41 = vpop.eup %2009  ;;  %v1795_v42 = vld [vmem:[#allocation2 + $0x58] sm:$0xff]  ;;  %v1207_v43 = vmul.f32 1.442695, %v1058_v35  ;;  %v932_v44 = vmul.f32 %v804_v36, %v804_v36 }
  0xb1   :  { %v931_v45 = vmul.f32 %v803_v37, %v803_v37  ;;  %v2012_v46 = vpop.eup %2011  ;;  %1796 = vst [vmem:[%s3155_s1 + $0x58] sm:$0xff] %v1795_v42  ;;  %v1793_v47 = vld [vmem:[#allocation2 + $0x50] sm:$0xff]  ;;  %1437 = vst.msk [vmem:[#allocation2 + $0x78] sm:$0xff] %vm1421_vm0, %v2010_v41  ;;  %v1205_v48 = vmul.f32 1.442695, %v1057_v38  ;;  %v269_v49 = vpop.permute.xlu1 %268  ;;  %v109_v41 = vld [vmem:[%s3154_s0 + $0x300] sm:$0xff] }
  0xb2   :  { %v264_v50 = vpop.permute.xlu0 %263  ;;  %1794 = vst [vmem:[%s3155_s1 + $0x50] sm:$0xff] %v1793_v47  ;;  %1436 = vst.msk [vmem:[#allocation2 + $0x70] sm:$0xff] %vm1421_vm0, %v2012_v46  ;;  %2021 = vpow2.f32 %v1207_v43  ;;  %v1060_v51 = vmul.f32 -48.02, %v932_v44  ;;  %v806_v53 = vsub.f32 %v269_v49, %v2440_v4  ;;  %588 = vperm.xlu1 %1980, %v102_v39   ;;  %583 = vperm.xlu0 %1979, %v101_v40   ;;  %v110_v40 = vld [vmem:[%s3154_s0 + $0x308] sm:$0xff] }
  0xb3   :  { %v1059_v52 = vmul.f32 -48.02, %v931_v45  ;;  %2023 = vpow2.f32 %v1205_v48  ;;  %v805_v54 = vsub.f32 %v264_v50, %v2440_v4 }
  0xb4   :  { %v2014_v57 = vpop.eup %2013  ;;  %v1799_v58 = vld [vmem:[#allocation2 + $0x68] sm:$0xff]  ;;  %v1211_v59 = vmul.f32 1.442695, %v1060_v51  ;;  %v934_v61 = vmul.f32 %v806_v53, %v806_v53 }
  0xb5   :  { %v1209_v60 = vmul.f32 1.442695, %v1059_v52  ;;  %v2016_v62 = vpop.eup %2015  ;;  %1800 = vst [vmem:[%s3155_s1 + $0x68] sm:$0xff] %v1799_v58  ;;  %v1797_v63 = vld [vmem:[#allocation2 + $0x60] sm:$0xff]  ;;  %1439 = vst.msk [vmem:[#allocation2 + $0x88] sm:$0xff] %vm1421_vm0, %v2014_v57  ;;  %v933_v0 = vmul.f32 %v805_v54, %v805_v54  ;;  %v279_v1 = vpop.permute.xlu1 %278  ;;  %v111_v57 = vld [vmem:[%s3154_s0 + $0x310] sm:$0xff] }
  0xb6   :  { %v274_v2 = vpop.permute.xlu0 %273  ;;  %1798 = vst [vmem:[%s3155_s1 + $0x60] sm:$0xff] %v1797_v63  ;;  %1438 = vst.msk [vmem:[#allocation2 + $0x80] sm:$0xff] %vm1421_vm0, %v2016_v62  ;;  %2025 = vpow2.f32 %v1211_v59  ;;  %v1062_v3 = vmul.f32 -48.02, %v934_v61  ;;  %v808_v5 = vsub.f32 %v279_v1, %v2440_v4  ;;  %598 = vperm.xlu1 %1980, %v104_v55   ;;  %593 = vperm.xlu0 %1979, %v103_v56   ;;  %v112_v56 = vld [vmem:[%s3154_s0 + $0x318] sm:$0xff] }
  0xb7   :  { %v807_v6 = vsub.f32 %v274_v2, %v2440_v4  ;;  %2027 = vpow2.f32 %v1209_v60  ;;  %v1061_v7 = vmul.f32 -48.02, %v933_v0 }
  0xb8   :  { %v2018_v10 = vpop.eup %2017  ;;  %v1803_v11 = vld [vmem:[#allocation2 + $0x78] sm:$0xff]  ;;  %v1215_v12 = vmul.f32 1.442695, %v1062_v3  ;;  %v936_v13 = vmul.f32 %v808_v5, %v808_v5 }
  0xb9   :  { %v935_v14 = vmul.f32 %v807_v6, %v807_v6  ;;  %v2020_v15 = vpop.eup %2019  ;;  %1804 = vst [vmem:[%s3155_s1 + $0x78] sm:$0xff] %v1803_v11  ;;  %v1801_v16 = vld [vmem:[#allocation2 + $0x70] sm:$0xff]  ;;  %1441 = vst.msk [vmem:[#allocation2 + $0x98] sm:$0xff] %vm1421_vm0, %v2018_v10  ;;  %v1213_v17 = vmul.f32 1.442695, %v1061_v7  ;;  %v289_v18 = vpop.permute.xlu1 %288  ;;  %v113_v10 = vld [vmem:[%s3154_s0 + $0x320] sm:$0xff] }
  0xba   :  { %v284_v19 = vpop.permute.xlu0 %283  ;;  %1802 = vst [vmem:[%s3155_s1 + $0x70] sm:$0xff] %v1801_v16  ;;  %1440 = vst.msk [vmem:[#allocation2 + $0x90] sm:$0xff] %vm1421_vm0, %v2020_v15  ;;  %2029 = vpow2.f32 %v1215_v12  ;;  %v1064_v20 = vmul.f32 -48.02, %v936_v13  ;;  %v810_v22 = vsub.f32 %v289_v18, %v2440_v4  ;;  %608 = vperm.xlu1 %1980, %v106_v8   ;;  %603 = vperm.xlu0 %1979, %v105_v9   ;;  %v114_v9 = vld [vmem:[%s3154_s0 + $0x328] sm:$0xff] }
  0xbb   :  { %v1063_v21 = vmul.f32 -48.02, %v935_v14  ;;  %2031 = vpow2.f32 %v1213_v17  ;;  %v809_v23 = vsub.f32 %v284_v19, %v2440_v4 }
  0xbc   :  { %v2022_v26 = vpop.eup %2021  ;;  %v1807_v27 = vld [vmem:[#allocation2 + $0x88] sm:$0xff]  ;;  %v1219_v28 = vmul.f32 1.442695, %v1064_v20  ;;  %v938_v30 = vmul.f32 %v810_v22, %v810_v22 }
  0xbd   :  { %v1217_v29 = vmul.f32 1.442695, %v1063_v21  ;;  %v2024_v31 = vpop.eup %2023  ;;  %1808 = vst [vmem:[%s3155_s1 + $0x88] sm:$0xff] %v1807_v27  ;;  %v1805_v32 = vld [vmem:[#allocation2 + $0x80] sm:$0xff]  ;;  %1443 = vst.msk [vmem:[#allocation2 + $0xa8] sm:$0xff] %vm1421_vm0, %v2022_v26  ;;  %v937_v33 = vmul.f32 %v809_v23, %v809_v23  ;;  %v299_v34 = vpop.permute.xlu1 %298  ;;  %v115_v26 = vld [vmem:[%s3154_s0 + $0x330] sm:$0xff] }
  0xbe   :  { %v294_v35 = vpop.permute.xlu0 %293  ;;  %1806 = vst [vmem:[%s3155_s1 + $0x80] sm:$0xff] %v1805_v32  ;;  %1442 = vst.msk [vmem:[#allocation2 + $0xa0] sm:$0xff] %vm1421_vm0, %v2024_v31  ;;  %2033 = vpow2.f32 %v1219_v28  ;;  %v1066_v36 = vmul.f32 -48.02, %v938_v30  ;;  %v812_v37 = vsub.f32 %v299_v34, %v2440_v4  ;;  %618 = vperm.xlu1 %1980, %v108_v24   ;;  %613 = vperm.xlu0 %1979, %v107_v25   ;;  %v116_v25 = vld [vmem:[%s3154_s0 + $0x338] sm:$0xff] }
  0xbf   :  { %v811_v38 = vsub.f32 %v294_v35, %v2440_v4  ;;  %2035 = vpow2.f32 %v1217_v29  ;;  %v1065_v39 = vmul.f32 -48.02, %v937_v33 }
  0xc0   :  { %v2026_v42 = vpop.eup %2025  ;;  %v1811_v43 = vld [vmem:[#allocation2 + $0x98] sm:$0xff]  ;;  %v1223_v44 = vmul.f32 1.442695, %v1066_v36  ;;  %v940_v45 = vmul.f32 %v812_v37, %v812_v37 }
  0xc1   :  { %v939_v46 = vmul.f32 %v811_v38, %v811_v38  ;;  %v2028_v47 = vpop.eup %2027  ;;  %1812 = vst [vmem:[%s3155_s1 + $0x98] sm:$0xff] %v1811_v43  ;;  %v1809_v48 = vld [vmem:[#allocation2 + $0x90] sm:$0xff]  ;;  %1445 = vst.msk [vmem:[#allocation2 + $0xb8] sm:$0xff] %vm1421_vm0, %v2026_v42  ;;  %v1221_v49 = vmul.f32 1.442695, %v1065_v39  ;;  %v309_v50 = vpop.permute.xlu1 %308  ;;  %v117_v42 = vld [vmem:[%s3154_s0 + $0x340] sm:$0xff] }
  0xc2   :  { %v304_v51 = vpop.permute.xlu0 %303  ;;  %1810 = vst [vmem:[%s3155_s1 + $0x90] sm:$0xff] %v1809_v48  ;;  %1444 = vst.msk [vmem:[#allocation2 + $0xb0] sm:$0xff] %vm1421_vm0, %v2028_v47  ;;  %2037 = vpow2.f32 %v1223_v44  ;;  %v1068_v52 = vmul.f32 -48.02, %v940_v45  ;;  %v814_v54 = vsub.f32 %v309_v50, %v2440_v4  ;;  %628 = vperm.xlu1 %1980, %v110_v40   ;;  %623 = vperm.xlu0 %1979, %v109_v41   ;;  %v118_v41 = vld [vmem:[%s3154_s0 + $0x348] sm:$0xff] }
  0xc3   :  { %v1067_v53 = vmul.f32 -48.02, %v939_v46  ;;  %2039 = vpow2.f32 %v1221_v49  ;;  %v813_v55 = vsub.f32 %v304_v51, %v2440_v4 }
  0xc4   :  { %v2030_v58 = vpop.eup %2029  ;;  %v1815_v59 = vld [vmem:[#allocation2 + $0xa8] sm:$0xff]  ;;  %v1227_v60 = vmul.f32 1.442695, %v1068_v52  ;;  %v942_v62 = vmul.f32 %v814_v54, %v814_v54 }
  0xc5   :  { %v1225_v61 = vmul.f32 1.442695, %v1067_v53  ;;  %v2032_v63 = vpop.eup %2031  ;;  %1816 = vst [vmem:[%s3155_s1 + $0xa8] sm:$0xff] %v1815_v59  ;;  %v1813_v0 = vld [vmem:[#allocation2 + $0xa0] sm:$0xff]  ;;  %1447 = vst.msk [vmem:[#allocation2 + $0xc8] sm:$0xff] %vm1421_vm0, %v2030_v58  ;;  %v941_v1 = vmul.f32 %v813_v55, %v813_v55  ;;  %v319_v2 = vpop.permute.xlu1 %318  ;;  %v119_v58 = vld [vmem:[%s3154_s0 + $0x350] sm:$0xff] }
  0xc6   :  { %v314_v3 = vpop.permute.xlu0 %313  ;;  %1814 = vst [vmem:[%s3155_s1 + $0xa0] sm:$0xff] %v1813_v0  ;;  %1446 = vst.msk [vmem:[#allocation2 + $0xc0] sm:$0xff] %vm1421_vm0, %v2032_v63  ;;  %2041 = vpow2.f32 %v1227_v60  ;;  %v1070_v5 = vmul.f32 -48.02, %v942_v62  ;;  %v816_v6 = vsub.f32 %v319_v2, %v2440_v4  ;;  %638 = vperm.xlu1 %1980, %v112_v56   ;;  %633 = vperm.xlu0 %1979, %v111_v57   ;;  %v120_v57 = vld [vmem:[%s3154_s0 + $0x358] sm:$0xff] }
  0xc7   :  { %v815_v7 = vsub.f32 %v314_v3, %v2440_v4  ;;  %2043 = vpow2.f32 %v1225_v61  ;;  %v1069_v8 = vmul.f32 -48.02, %v941_v1 }
  0xc8   :  { %v2034_v11 = vpop.eup %2033  ;;  %v1819_v12 = vld [vmem:[#allocation2 + $0xb8] sm:$0xff]  ;;  %v1231_v13 = vmul.f32 1.442695, %v1070_v5  ;;  %v944_v14 = vmul.f32 %v816_v6, %v816_v6 }
  0xc9   :  { %v943_v15 = vmul.f32 %v815_v7, %v815_v7  ;;  %v2036_v16 = vpop.eup %2035  ;;  %1820 = vst [vmem:[%s3155_s1 + $0xb8] sm:$0xff] %v1819_v12  ;;  %v1817_v17 = vld [vmem:[#allocation2 + $0xb0] sm:$0xff]  ;;  %1449 = vst.msk [vmem:[#allocation2 + $0xd8] sm:$0xff] %vm1421_vm0, %v2034_v11  ;;  %v1229_v18 = vmul.f32 1.442695, %v1069_v8  ;;  %v329_v19 = vpop.permute.xlu1 %328  ;;  %v121_v11 = vld [vmem:[%s3154_s0 + $0x360] sm:$0xff] }
  0xca   :  { %v324_v20 = vpop.permute.xlu0 %323  ;;  %1818 = vst [vmem:[%s3155_s1 + $0xb0] sm:$0xff] %v1817_v17  ;;  %1448 = vst.msk [vmem:[#allocation2 + $0xd0] sm:$0xff] %vm1421_vm0, %v2036_v16  ;;  %2045 = vpow2.f32 %v1231_v13  ;;  %v1072_v21 = vmul.f32 -48.02, %v944_v14  ;;  %v818_v23 = vsub.f32 %v329_v19, %v2440_v4  ;;  %648 = vperm.xlu1 %1980, %v114_v9   ;;  %643 = vperm.xlu0 %1979, %v113_v10   ;;  %v122_v10 = vld [vmem:[%s3154_s0 + $0x368] sm:$0xff] }
  0xcb   :  { %v1071_v22 = vmul.f32 -48.02, %v943_v15  ;;  %2047 = vpow2.f32 %v1229_v18  ;;  %v817_v24 = vsub.f32 %v324_v20, %v2440_v4 }
  0xcc   :  { %v2038_v27 = vpop.eup %2037  ;;  %v1823_v28 = vld [vmem:[#allocation2 + $0xc8] sm:$0xff]  ;;  %v1235_v29 = vmul.f32 1.442695, %v1072_v21  ;;  %v946_v31 = vmul.f32 %v818_v23, %v818_v23 }
  0xcd   :  { %v1233_v30 = vmul.f32 1.442695, %v1071_v22  ;;  %v2040_v32 = vpop.eup %2039  ;;  %1824 = vst [vmem:[%s3155_s1 + $0xc8] sm:$0xff] %v1823_v28  ;;  %v1821_v33 = vld [vmem:[#allocation2 + $0xc0] sm:$0xff]  ;;  %1451 = vst.msk [vmem:[#allocation2 + $0xe8] sm:$0xff] %vm1421_vm0, %v2038_v27  ;;  %v945_v34 = vmul.f32 %v817_v24, %v817_v24  ;;  %v339_v35 = vpop.permute.xlu1 %338  ;;  %v123_v27 = vld [vmem:[%s3154_s0 + $0x370] sm:$0xff] }
  0xce   :  { %v334_v36 = vpop.permute.xlu0 %333  ;;  %1822 = vst [vmem:[%s3155_s1 + $0xc0] sm:$0xff] %v1821_v33  ;;  %1450 = vst.msk [vmem:[#allocation2 + $0xe0] sm:$0xff] %vm1421_vm0, %v2040_v32  ;;  %2049 = vpow2.f32 %v1235_v29  ;;  %v1074_v37 = vmul.f32 -48.02, %v946_v31  ;;  %v820_v38 = vsub.f32 %v339_v35, %v2440_v4  ;;  %658 = vperm.xlu1 %1980, %v116_v25   ;;  %653 = vperm.xlu0 %1979, %v115_v26   ;;  %v124_v26 = vld [vmem:[%s3154_s0 + $0x378] sm:$0xff] }
  0xcf   :  { %v819_v39 = vsub.f32 %v334_v36, %v2440_v4  ;;  %2051 = vpow2.f32 %v1233_v30  ;;  %v1073_v40 = vmul.f32 -48.02, %v945_v34 }
  0xd0   :  { %v2042_v43 = vpop.eup %2041  ;;  %v1827_v44 = vld [vmem:[#allocation2 + $0xd8] sm:$0xff]  ;;  %v1239_v45 = vmul.f32 1.442695, %v1074_v37  ;;  %v948_v46 = vmul.f32 %v820_v38, %v820_v38 }
  0xd1   :  { %v947_v47 = vmul.f32 %v819_v39, %v819_v39  ;;  %v2044_v48 = vpop.eup %2043  ;;  %1828 = vst [vmem:[%s3155_s1 + $0xd8] sm:$0xff] %v1827_v44  ;;  %v1825_v49 = vld [vmem:[#allocation2 + $0xd0] sm:$0xff]  ;;  %1453 = vst.msk [vmem:[#allocation2 + $0xf8] sm:$0xff] %vm1421_vm0, %v2042_v43  ;;  %v1237_v50 = vmul.f32 1.442695, %v1073_v40  ;;  %v349_v51 = vpop.permute.xlu1 %348  ;;  %v125_v43 = vld [vmem:[%s3154_s0 + $0x380] sm:$0xff] }
  0xd2   :  { %v344_v52 = vpop.permute.xlu0 %343  ;;  %1826 = vst [vmem:[%s3155_s1 + $0xd0] sm:$0xff] %v1825_v49  ;;  %1452 = vst.msk [vmem:[#allocation2 + $0xf0] sm:$0xff] %vm1421_vm0, %v2044_v48  ;;  %2053 = vpow2.f32 %v1239_v45  ;;  %v1076_v53 = vmul.f32 -48.02, %v948_v46  ;;  %v822_v55 = vsub.f32 %v349_v51, %v2440_v4  ;;  %668 = vperm.xlu1 %1980, %v118_v41   ;;  %663 = vperm.xlu0 %1979, %v117_v42   ;;  %v126_v42 = vld [vmem:[%s3154_s0 + $0x388] sm:$0xff] }
  0xd3   :  { %v1075_v54 = vmul.f32 -48.02, %v947_v47  ;;  %2055 = vpow2.f32 %v1237_v50  ;;  %v821_v56 = vsub.f32 %v344_v52, %v2440_v4 }
  0xd4   :  { %v2046_v59 = vpop.eup %2045  ;;  %v1831_v60 = vld [vmem:[#allocation2 + $0xe8] sm:$0xff]  ;;  %v1243_v61 = vmul.f32 1.442695, %v1076_v53  ;;  %v950_v63 = vmul.f32 %v822_v55, %v822_v55 }
  0xd5   :  { %v1241_v62 = vmul.f32 1.442695, %v1075_v54  ;;  %v2048_v0 = vpop.eup %2047  ;;  %1832 = vst [vmem:[%s3155_s1 + $0xe8] sm:$0xff] %v1831_v60  ;;  %v1829_v1 = vld [vmem:[#allocation2 + $0xe0] sm:$0xff]  ;;  %1455 = vst.msk [vmem:[#allocation2 + $0x108] sm:$0xff] %vm1421_vm0, %v2046_v59  ;;  %v949_v2 = vmul.f32 %v821_v56, %v821_v56  ;;  %v359_v3 = vpop.permute.xlu1 %358  ;;  %v127_v59 = vld [vmem:[%s3154_s0 + $0x390] sm:$0xff] }
  0xd6   :  { %v354_v5 = vpop.permute.xlu0 %353  ;;  %1830 = vst [vmem:[%s3155_s1 + $0xe0] sm:$0xff] %v1829_v1  ;;  %1454 = vst.msk [vmem:[#allocation2 + $0x100] sm:$0xff] %vm1421_vm0, %v2048_v0  ;;  %2057 = vpow2.f32 %v1243_v61  ;;  %v1078_v6 = vmul.f32 -48.02, %v950_v63  ;;  %v824_v7 = vsub.f32 %v359_v3, %v2440_v4  ;;  %678 = vperm.xlu1 %1980, %v120_v57   ;;  %673 = vperm.xlu0 %1979, %v119_v58   ;;  %v128_v58 = vld [vmem:[%s3154_s0 + $0x398] sm:$0xff] }
  0xd7   :  { %v823_v8 = vsub.f32 %v354_v5, %v2440_v4  ;;  %2059 = vpow2.f32 %v1241_v62  ;;  %v1077_v9 = vmul.f32 -48.02, %v949_v2 }
  0xd8   :  { %v2050_v12 = vpop.eup %2049  ;;  %v1835_v13 = vld [vmem:[#allocation2 + $0xf8] sm:$0xff]  ;;  %v1247_v14 = vmul.f32 1.442695, %v1078_v6  ;;  %v952_v15 = vmul.f32 %v824_v7, %v824_v7 }
  0xd9   :  { %v951_v16 = vmul.f32 %v823_v8, %v823_v8  ;;  %v2052_v17 = vpop.eup %2051  ;;  %1836 = vst [vmem:[%s3155_s1 + $0xf8] sm:$0xff] %v1835_v13  ;;  %v1833_v18 = vld [vmem:[#allocation2 + $0xf0] sm:$0xff]  ;;  %1457 = vst.msk [vmem:[#allocation2 + $0x118] sm:$0xff] %vm1421_vm0, %v2050_v12  ;;  %v1245_v19 = vmul.f32 1.442695, %v1077_v9  ;;  %v369_v20 = vpop.permute.xlu1 %368  ;;  %v129_v12 = vld [vmem:[%s3154_s0 + $0x3a0] sm:$0xff] }
  0xda   :  { %v364_v21 = vpop.permute.xlu0 %363  ;;  %1834 = vst [vmem:[%s3155_s1 + $0xf0] sm:$0xff] %v1833_v18  ;;  %1456 = vst.msk [vmem:[#allocation2 + $0x110] sm:$0xff] %vm1421_vm0, %v2052_v17  ;;  %2061 = vpow2.f32 %v1247_v14  ;;  %v1080_v22 = vmul.f32 -48.02, %v952_v15  ;;  %v826_v24 = vsub.f32 %v369_v20, %v2440_v4  ;;  %688 = vperm.xlu1 %1980, %v122_v10   ;;  %683 = vperm.xlu0 %1979, %v121_v11   ;;  %v130_v11 = vld [vmem:[%s3154_s0 + $0x3a8] sm:$0xff] }
  0xdb   :  { %v1079_v23 = vmul.f32 -48.02, %v951_v16  ;;  %2063 = vpow2.f32 %v1245_v19  ;;  %v825_v25 = vsub.f32 %v364_v21, %v2440_v4 }
  0xdc   :  { %v2054_v28 = vpop.eup %2053  ;;  %v1839_v29 = vld [vmem:[#allocation2 + $0x108] sm:$0xff]  ;;  %v1251_v30 = vmul.f32 1.442695, %v1080_v22  ;;  %v954_v32 = vmul.f32 %v826_v24, %v826_v24 }
  0xdd   :  { %v1249_v31 = vmul.f32 1.442695, %v1079_v23  ;;  %v2056_v33 = vpop.eup %2055  ;;  %1840 = vst [vmem:[%s3155_s1 + $0x108] sm:$0xff] %v1839_v29  ;;  %v1837_v34 = vld [vmem:[#allocation2 + $0x100] sm:$0xff]  ;;  %1459 = vst.msk [vmem:[#allocation2 + $0x128] sm:$0xff] %vm1421_vm0, %v2054_v28  ;;  %v953_v35 = vmul.f32 %v825_v25, %v825_v25  ;;  %v379_v36 = vpop.permute.xlu1 %378  ;;  %v131_v28 = vld [vmem:[%s3154_s0 + $0x3b0] sm:$0xff] }
  0xde   :  { %v374_v37 = vpop.permute.xlu0 %373  ;;  %1838 = vst [vmem:[%s3155_s1 + $0x100] sm:$0xff] %v1837_v34  ;;  %1458 = vst.msk [vmem:[#allocation2 + $0x120] sm:$0xff] %vm1421_vm0, %v2056_v33  ;;  %2065 = vpow2.f32 %v1251_v30  ;;  %v1082_v38 = vmul.f32 -48.02, %v954_v32  ;;  %v828_v39 = vsub.f32 %v379_v36, %v2440_v4  ;;  %698 = vperm.xlu1 %1980, %v124_v26   ;;  %693 = vperm.xlu0 %1979, %v123_v27   ;;  %v132_v27 = vld [vmem:[%s3154_s0 + $0x3b8] sm:$0xff] }
  0xdf   :  { %v827_v40 = vsub.f32 %v374_v37, %v2440_v4  ;;  %2067 = vpow2.f32 %v1249_v31  ;;  %v1081_v41 = vmul.f32 -48.02, %v953_v35 }
  0xe0   :  { %v2058_v44 = vpop.eup %2057  ;;  %v1843_v45 = vld [vmem:[#allocation2 + $0x118] sm:$0xff]  ;;  %v1255_v46 = vmul.f32 1.442695, %v1082_v38  ;;  %v956_v47 = vmul.f32 %v828_v39, %v828_v39 }
  0xe1   :  { %v955_v48 = vmul.f32 %v827_v40, %v827_v40  ;;  %v2060_v49 = vpop.eup %2059  ;;  %1844 = vst [vmem:[%s3155_s1 + $0x118] sm:$0xff] %v1843_v45  ;;  %v1841_v50 = vld [vmem:[#allocation2 + $0x110] sm:$0xff]  ;;  %1461 = vst.msk [vmem:[#allocation2 + $0x138] sm:$0xff] %vm1421_vm0, %v2058_v44  ;;  %v1253_v51 = vmul.f32 1.442695, %v1081_v41  ;;  %v389_v52 = vpop.permute.xlu1 %388  ;;  %v133_v44 = vld [vmem:[%s3154_s0 + $0x3c0] sm:$0xff] }
  0xe2   :  { %v384_v53 = vpop.permute.xlu0 %383  ;;  %1842 = vst [vmem:[%s3155_s1 + $0x110] sm:$0xff] %v1841_v50  ;;  %1460 = vst.msk [vmem:[#allocation2 + $0x130] sm:$0xff] %vm1421_vm0, %v2060_v49  ;;  %2069 = vpow2.f32 %v1255_v46  ;;  %v1084_v54 = vmul.f32 -48.02, %v956_v47  ;;  %v830_v56 = vsub.f32 %v389_v52, %v2440_v4  ;;  %708 = vperm.xlu1 %1980, %v126_v42   ;;  %703 = vperm.xlu0 %1979, %v125_v43   ;;  %v134_v43 = vld [vmem:[%s3154_s0 + $0x3c8] sm:$0xff] }
  0xe3   :  { %v1083_v55 = vmul.f32 -48.02, %v955_v48  ;;  %2071 = vpow2.f32 %v1253_v51  ;;  %v829_v57 = vsub.f32 %v384_v53, %v2440_v4 }
  0xe4   :  { %v2062_v60 = vpop.eup %2061  ;;  %v1847_v61 = vld [vmem:[#allocation2 + $0x128] sm:$0xff]  ;;  %v1259_v62 = vmul.f32 1.442695, %v1084_v54  ;;  %v958_v0 = vmul.f32 %v830_v56, %v830_v56 }
  0xe5   :  { %v1257_v63 = vmul.f32 1.442695, %v1083_v55  ;;  %v2064_v1 = vpop.eup %2063  ;;  %1848 = vst [vmem:[%s3155_s1 + $0x128] sm:$0xff] %v1847_v61  ;;  %v1845_v2 = vld [vmem:[#allocation2 + $0x120] sm:$0xff]  ;;  %1463 = vst.msk [vmem:[#allocation2 + $0x148] sm:$0xff] %vm1421_vm0, %v2062_v60  ;;  %v957_v3 = vmul.f32 %v829_v57, %v829_v57  ;;  %v399_v5 = vpop.permute.xlu1 %398  ;;  %v135_v60 = vld [vmem:[%s3154_s0 + $0x3d0] sm:$0xff] }
  0xe6   :  { %v394_v6 = vpop.permute.xlu0 %393  ;;  %1846 = vst [vmem:[%s3155_s1 + $0x120] sm:$0xff] %v1845_v2  ;;  %1462 = vst.msk [vmem:[#allocation2 + $0x140] sm:$0xff] %vm1421_vm0, %v2064_v1  ;;  %2073 = vpow2.f32 %v1259_v62  ;;  %v1086_v7 = vmul.f32 -48.02, %v958_v0  ;;  %v832_v8 = vsub.f32 %v399_v5, %v2440_v4  ;;  %718 = vperm.xlu1 %1980, %v128_v58   ;;  %713 = vperm.xlu0 %1979, %v127_v59   ;;  %v136_v59 = vld [vmem:[%s3154_s0 + $0x3d8] sm:$0xff] }
  0xe7   :  { %v831_v9 = vsub.f32 %v394_v6, %v2440_v4  ;;  %2075 = vpow2.f32 %v1257_v63  ;;  %v1085_v10 = vmul.f32 -48.02, %v957_v3 }
  0xe8   :  { %v2066_v13 = vpop.eup %2065  ;;  %v1851_v14 = vld [vmem:[#allocation2 + $0x138] sm:$0xff]  ;;  %v1263_v15 = vmul.f32 1.442695, %v1086_v7  ;;  %v960_v16 = vmul.f32 %v832_v8, %v832_v8 }
  0xe9   :  { %v959_v17 = vmul.f32 %v831_v9, %v831_v9  ;;  %v2068_v18 = vpop.eup %2067  ;;  %1852 = vst [vmem:[%s3155_s1 + $0x138] sm:$0xff] %v1851_v14  ;;  %v1849_v19 = vld [vmem:[#allocation2 + $0x130] sm:$0xff]  ;;  %1465 = vst.msk [vmem:[#allocation2 + $0x158] sm:$0xff] %vm1421_vm0, %v2066_v13  ;;  %v1261_v20 = vmul.f32 1.442695, %v1085_v10  ;;  %v409_v21 = vpop.permute.xlu1 %408  ;;  %v137_v13 = vld [vmem:[%s3154_s0 + $0x3e0] sm:$0xff] }
  0xea   :  { %v404_v22 = vpop.permute.xlu0 %403  ;;  %1850 = vst [vmem:[%s3155_s1 + $0x130] sm:$0xff] %v1849_v19  ;;  %1464 = vst.msk [vmem:[#allocation2 + $0x150] sm:$0xff] %vm1421_vm0, %v2068_v18  ;;  %2077 = vpow2.f32 %v1263_v15  ;;  %v1088_v23 = vmul.f32 -48.02, %v960_v16  ;;  %v834_v25 = vsub.f32 %v409_v21, %v2440_v4  ;;  %728 = vperm.xlu1 %1980, %v130_v11   ;;  %723 = vperm.xlu0 %1979, %v129_v12   ;;  %v138_v12 = vld [vmem:[%s3154_s0 + $0x3e8] sm:$0xff] }
  0xeb   :  { %v1087_v24 = vmul.f32 -48.02, %v959_v17  ;;  %2079 = vpow2.f32 %v1261_v20  ;;  %v833_v26 = vsub.f32 %v404_v22, %v2440_v4 }
  0xec   :  { %v2070_v29 = vpop.eup %2069  ;;  %v1855_v30 = vld [vmem:[#allocation2 + $0x148] sm:$0xff]  ;;  %v1267_v31 = vmul.f32 1.442695, %v1088_v23  ;;  %v962_v33 = vmul.f32 %v834_v25, %v834_v25 }
  0xed   :  { %v1265_v32 = vmul.f32 1.442695, %v1087_v24  ;;  %v2072_v34 = vpop.eup %2071  ;;  %1856 = vst [vmem:[%s3155_s1 + $0x148] sm:$0xff] %v1855_v30  ;;  %v1853_v35 = vld [vmem:[#allocation2 + $0x140] sm:$0xff]  ;;  %1467 = vst.msk [vmem:[#allocation2 + $0x168] sm:$0xff] %vm1421_vm0, %v2070_v29  ;;  %v961_v36 = vmul.f32 %v833_v26, %v833_v26  ;;  %v419_v37 = vpop.permute.xlu1 %418  ;;  %v139_v29 = vld [vmem:[%s3154_s0 + $0x3f0] sm:$0xff] }
  0xee   :  { %v414_v38 = vpop.permute.xlu0 %413  ;;  %1854 = vst [vmem:[%s3155_s1 + $0x140] sm:$0xff] %v1853_v35  ;;  %1466 = vst.msk [vmem:[#allocation2 + $0x160] sm:$0xff] %vm1421_vm0, %v2072_v34  ;;  %2081 = vpow2.f32 %v1267_v31  ;;  %v1090_v39 = vmul.f32 -48.02, %v962_v33  ;;  %v836_v40 = vsub.f32 %v419_v37, %v2440_v4  ;;  %738 = vperm.xlu1 %1980, %v132_v27   ;;  %733 = vperm.xlu0 %1979, %v131_v28   ;;  %v140_v28 = vld [vmem:[%s3154_s0 + $0x3f8] sm:$0xff] }
  0xef   :  { %v835_v41 = vsub.f32 %v414_v38, %v2440_v4  ;;  %2083 = vpow2.f32 %v1265_v32  ;;  %v1089_v42 = vmul.f32 -48.02, %v961_v36 }
  0xf0   :  { %v2074_v45 = vpop.eup %2073  ;;  %v1859_v46 = vld [vmem:[#allocation2 + $0x158] sm:$0xff]  ;;  %v1271_v47 = vmul.f32 1.442695, %v1090_v39  ;;  %v964_v48 = vmul.f32 %v836_v40, %v836_v40 }
  0xf1   :  { %v963_v49 = vmul.f32 %v835_v41, %v835_v41  ;;  %v2076_v50 = vpop.eup %2075  ;;  %1860 = vst [vmem:[%s3155_s1 + $0x158] sm:$0xff] %v1859_v46  ;;  %v1857_v51 = vld [vmem:[#allocation2 + $0x150] sm:$0xff]  ;;  %1469 = vst.msk [vmem:[#allocation2 + $0x178] sm:$0xff] %vm1421_vm0, %v2074_v45  ;;  %v1269_v52 = vmul.f32 1.442695, %v1089_v42  ;;  %v429_v53 = vpop.permute.xlu1 %428 }
  0xf2   :  { %v424_v54 = vpop.permute.xlu0 %423  ;;  %1858 = vst [vmem:[%s3155_s1 + $0x150] sm:$0xff] %v1857_v51  ;;  %1468 = vst.msk [vmem:[#allocation2 + $0x170] sm:$0xff] %vm1421_vm0, %v2076_v50  ;;  %2085 = vpow2.f32 %v1271_v47  ;;  %v1092_v55 = vmul.f32 -48.02, %v964_v48  ;;  %v838_v57 = vsub.f32 %v429_v53, %v2440_v4  ;;  %748 = vperm.xlu1 %1980, %v134_v43   ;;  %743 = vperm.xlu0 %1979, %v133_v44  }
  0xf3   :  { %v1091_v56 = vmul.f32 -48.02, %v963_v49  ;;  %2087 = vpow2.f32 %v1269_v52  ;;  %v837_v58 = vsub.f32 %v424_v54, %v2440_v4 }
  0xf4   :  { %v2078_v61 = vpop.eup %2077  ;;  %v1863_v62 = vld [vmem:[#allocation2 + $0x168] sm:$0xff]  ;;  %v1275_v63 = vmul.f32 1.442695, %v1092_v55  ;;  %v966_v1 = vmul.f32 %v838_v57, %v838_v57 }
  0xf5   :  { %v1273_v0 = vmul.f32 1.442695, %v1091_v56  ;;  %v2080_v2 = vpop.eup %2079  ;;  %1864 = vst [vmem:[%s3155_s1 + $0x168] sm:$0xff] %v1863_v62  ;;  %v1861_v3 = vld [vmem:[#allocation2 + $0x160] sm:$0xff]  ;;  %1471 = vst.msk [vmem:[#allocation2 + $0x188] sm:$0xff] %vm1421_vm0, %v2078_v61  ;;  %v965_v5 = vmul.f32 %v837_v58, %v837_v58  ;;  %v439_v6 = vpop.permute.xlu1 %438 }
  0xf6   :  { %v434_v7 = vpop.permute.xlu0 %433  ;;  %1862 = vst [vmem:[%s3155_s1 + $0x160] sm:$0xff] %v1861_v3  ;;  %1470 = vst.msk [vmem:[#allocation2 + $0x180] sm:$0xff] %vm1421_vm0, %v2080_v2  ;;  %2089 = vpow2.f32 %v1275_v63  ;;  %v1094_v8 = vmul.f32 -48.02, %v966_v1  ;;  %v840_v9 = vsub.f32 %v439_v6, %v2440_v4  ;;  %758 = vperm.xlu1 %1980, %v136_v59   ;;  %753 = vperm.xlu0 %1979, %v135_v60  }
  0xf7   :  { %v839_v10 = vsub.f32 %v434_v7, %v2440_v4  ;;  %2091 = vpow2.f32 %v1273_v0  ;;  %v1093_v11 = vmul.f32 -48.02, %v965_v5 }
  0xf8   :  { %v2082_v14 = vpop.eup %2081  ;;  %v1867_v15 = vld [vmem:[#allocation2 + $0x178] sm:$0xff]  ;;  %v1279_v16 = vmul.f32 1.442695, %v1094_v8  ;;  %v968_v17 = vmul.f32 %v840_v9, %v840_v9 }
  0xf9   :  { %v967_v18 = vmul.f32 %v839_v10, %v839_v10  ;;  %v2084_v19 = vpop.eup %2083  ;;  %1868 = vst [vmem:[%s3155_s1 + $0x178] sm:$0xff] %v1867_v15  ;;  %v1865_v20 = vld [vmem:[#allocation2 + $0x170] sm:$0xff]  ;;  %1473 = vst.msk [vmem:[#allocation2 + $0x198] sm:$0xff] %vm1421_vm0, %v2082_v14  ;;  %v1277_v21 = vmul.f32 1.442695, %v1093_v11  ;;  %v449_v22 = vpop.permute.xlu1 %448 }
  0xfa   :  { %v444_v23 = vpop.permute.xlu0 %443  ;;  %1866 = vst [vmem:[%s3155_s1 + $0x170] sm:$0xff] %v1865_v20  ;;  %1472 = vst.msk [vmem:[#allocation2 + $0x190] sm:$0xff] %vm1421_vm0, %v2084_v19  ;;  %2093 = vpow2.f32 %v1279_v16  ;;  %v1096_v24 = vmul.f32 -48.02, %v968_v17  ;;  %v842_v26 = vsub.f32 %v449_v22, %v2440_v4  ;;  %768 = vperm.xlu1 %1980, %v138_v12   ;;  %763 = vperm.xlu0 %1979, %v137_v13  }
  0xfb   :  { %v1095_v25 = vmul.f32 -48.02, %v967_v18  ;;  %2095 = vpow2.f32 %v1277_v21  ;;  %v841_v27 = vsub.f32 %v444_v23, %v2440_v4 }
  0xfc   :  { %v2086_v30 = vpop.eup %2085  ;;  %v1871_v31 = vld [vmem:[#allocation2 + $0x188] sm:$0xff]  ;;  %v1283_v32 = vmul.f32 1.442695, %v1096_v24  ;;  %v970_v34 = vmul.f32 %v842_v26, %v842_v26 }
  0xfd   :  { %v1281_v33 = vmul.f32 1.442695, %v1095_v25  ;;  %v2088_v35 = vpop.eup %2087  ;;  %1872 = vst [vmem:[%s3155_s1 + $0x188] sm:$0xff] %v1871_v31  ;;  %v1869_v36 = vld [vmem:[#allocation2 + $0x180] sm:$0xff]  ;;  %1475 = vst.msk [vmem:[#allocation2 + $0x1a8] sm:$0xff] %vm1421_vm0, %v2086_v30  ;;  %v969_v37 = vmul.f32 %v841_v27, %v841_v27  ;;  %v459_v38 = vpop.permute.xlu1 %458 }
  0xfe   :  { %v454_v39 = vpop.permute.xlu0 %453  ;;  %1870 = vst [vmem:[%s3155_s1 + $0x180] sm:$0xff] %v1869_v36  ;;  %1474 = vst.msk [vmem:[#allocation2 + $0x1a0] sm:$0xff] %vm1421_vm0, %v2088_v35  ;;  %2097 = vpow2.f32 %v1283_v32  ;;  %v1098_v40 = vmul.f32 -48.02, %v970_v34  ;;  %v844_v41 = vsub.f32 %v459_v38, %v2440_v4  ;;  %778 = vperm.xlu1 %1980, %v140_v28   ;;  %773 = vperm.xlu0 %1979, %v139_v29  }
  0xff   :  { %v843_v42 = vsub.f32 %v454_v39, %v2440_v4  ;;  %2099 = vpow2.f32 %v1281_v33  ;;  %v1097_v43 = vmul.f32 -48.02, %v969_v37 }
 0x100   :  { %v2090_v44 = vpop.eup %2089  ;;  %v1875_v45 = vld [vmem:[#allocation2 + $0x198] sm:$0xff]  ;;  %v1287_v46 = vmul.f32 1.442695, %v1098_v40  ;;  %v972_v47 = vmul.f32 %v844_v41, %v844_v41 }
 0x101   :  { %v971_v48 = vmul.f32 %v843_v42, %v843_v42  ;;  %v2092_v49 = vpop.eup %2091  ;;  %1876 = vst [vmem:[%s3155_s1 + $0x198] sm:$0xff] %v1875_v45  ;;  %v1873_v50 = vld [vmem:[#allocation2 + $0x190] sm:$0xff]  ;;  %1477 = vst.msk [vmem:[#allocation2 + $0x1b8] sm:$0xff] %vm1421_vm0, %v2090_v44  ;;  %v1285_v51 = vmul.f32 1.442695, %v1097_v43  ;;  %v469_v52 = vpop.permute.xlu1 %468 }
 0x102   :  { %v464_v53 = vpop.permute.xlu0 %463  ;;  %1874 = vst [vmem:[%s3155_s1 + $0x190] sm:$0xff] %v1873_v50  ;;  %1476 = vst.msk [vmem:[#allocation2 + $0x1b0] sm:$0xff] %vm1421_vm0, %v2092_v49  ;;  %2101 = vpow2.f32 %v1287_v46  ;;  %v1100_v54 = vmul.f32 -48.02, %v972_v47  ;;  %v846_v56 = vsub.f32 %v469_v52, %v2440_v4 }
 0x103   :  { %v1099_v55 = vmul.f32 -48.02, %v971_v48  ;;  %2103 = vpow2.f32 %v1285_v51  ;;  %v845_v57 = vsub.f32 %v464_v53, %v2440_v4 }
 0x104   :  { %v2094_v58 = vpop.eup %2093  ;;  %v1879_v59 = vld [vmem:[#allocation2 + $0x1a8] sm:$0xff]  ;;  %v1291_v60 = vmul.f32 1.442695, %v1100_v54  ;;  %v974_v62 = vmul.f32 %v846_v56, %v846_v56 }
 0x105   :  { %v1289_v61 = vmul.f32 1.442695, %v1099_v55  ;;  %v2096_v63 = vpop.eup %2095  ;;  %1880 = vst [vmem:[%s3155_s1 + $0x1a8] sm:$0xff] %v1879_v59  ;;  %v1877_v0 = vld [vmem:[#allocation2 + $0x1a0] sm:$0xff]  ;;  %1479 = vst.msk [vmem:[#allocation2 + $0x1c8] sm:$0xff] %vm1421_vm0, %v2094_v58  ;;  %v973_v1 = vmul.f32 %v845_v57, %v845_v57  ;;  %v479_v2 = vpop.permute.xlu1 %478 }
 0x106   :  { %v474_v3 = vpop.permute.xlu0 %473  ;;  %1878 = vst [vmem:[%s3155_s1 + $0x1a0] sm:$0xff] %v1877_v0  ;;  %1478 = vst.msk [vmem:[#allocation2 + $0x1c0] sm:$0xff] %vm1421_vm0, %v2096_v63  ;;  %2105 = vpow2.f32 %v1291_v60  ;;  %v1102_v5 = vmul.f32 -48.02, %v974_v62  ;;  %v848_v6 = vsub.f32 %v479_v2, %v2440_v4 }
 0x107   :  { %v847_v7 = vsub.f32 %v474_v3, %v2440_v4  ;;  %2107 = vpow2.f32 %v1289_v61  ;;  %v1101_v8 = vmul.f32 -48.02, %v973_v1 }
 0x108   :  { %v2098_v9 = vpop.eup %2097  ;;  %v1883_v10 = vld [vmem:[#allocation2 + $0x1b8] sm:$0xff]  ;;  %v1295_v11 = vmul.f32 1.442695, %v1102_v5  ;;  %v976_v12 = vmul.f32 %v848_v6, %v848_v6 }
 0x109   :  { %v975_v13 = vmul.f32 %v847_v7, %v847_v7  ;;  %v2100_v14 = vpop.eup %2099  ;;  %1884 = vst [vmem:[%s3155_s1 + $0x1b8] sm:$0xff] %v1883_v10  ;;  %v1881_v15 = vld [vmem:[#allocation2 + $0x1b0] sm:$0xff]  ;;  %1481 = vst.msk [vmem:[#allocation2 + $0x1d8] sm:$0xff] %vm1421_vm0, %v2098_v9  ;;  %v1293_v16 = vmul.f32 1.442695, %v1101_v8  ;;  %v489_v17 = vpop.permute.xlu1 %488 }
 0x10a   :  { %v484_v18 = vpop.permute.xlu0 %483  ;;  %1882 = vst [vmem:[%s3155_s1 + $0x1b0] sm:$0xff] %v1881_v15  ;;  %1480 = vst.msk [vmem:[#allocation2 + $0x1d0] sm:$0xff] %vm1421_vm0, %v2100_v14  ;;  %2109 = vpow2.f32 %v1295_v11  ;;  %v1104_v19 = vmul.f32 -48.02, %v976_v12  ;;  %v850_v21 = vsub.f32 %v489_v17, %v2440_v4 }
 0x10b   :  { %v1103_v20 = vmul.f32 -48.02, %v975_v13  ;;  %2111 = vpow2.f32 %v1293_v16  ;;  %v849_v22 = vsub.f32 %v484_v18, %v2440_v4 }
 0x10c   :  { %v2102_v23 = vpop.eup %2101  ;;  %v1887_v24 = vld [vmem:[#allocation2 + $0x1c8] sm:$0xff]  ;;  %v1299_v25 = vmul.f32 1.442695, %v1104_v19  ;;  %v978_v27 = vmul.f32 %v850_v21, %v850_v21 }
 0x10d   :  { %v1297_v26 = vmul.f32 1.442695, %v1103_v20  ;;  %v2104_v28 = vpop.eup %2103  ;;  %1888 = vst [vmem:[%s3155_s1 + $0x1c8] sm:$0xff] %v1887_v24  ;;  %v1885_v29 = vld [vmem:[#allocation2 + $0x1c0] sm:$0xff]  ;;  %1483 = vst.msk [vmem:[#allocation2 + $0x1e8] sm:$0xff] %vm1421_vm0, %v2102_v23  ;;  %v977_v30 = vmul.f32 %v849_v22, %v849_v22  ;;  %v499_v31 = vpop.permute.xlu1 %498 }
 0x10e   :  { %v494_v32 = vpop.permute.xlu0 %493  ;;  %1886 = vst [vmem:[%s3155_s1 + $0x1c0] sm:$0xff] %v1885_v29  ;;  %1482 = vst.msk [vmem:[#allocation2 + $0x1e0] sm:$0xff] %vm1421_vm0, %v2104_v28  ;;  %2113 = vpow2.f32 %v1299_v25  ;;  %v1106_v33 = vmul.f32 -48.02, %v978_v27  ;;  %v852_v34 = vsub.f32 %v499_v31, %v2440_v4 }
 0x10f   :  { %v851_v35 = vsub.f32 %v494_v32, %v2440_v4  ;;  %2115 = vpow2.f32 %v1297_v26  ;;  %v1105_v36 = vmul.f32 -48.02, %v977_v30 }
 0x110   :  { %v2106_v37 = vpop.eup %2105  ;;  %v1891_v38 = vld [vmem:[#allocation2 + $0x1d8] sm:$0xff]  ;;  %v1303_v39 = vmul.f32 1.442695, %v1106_v33  ;;  %v980_v40 = vmul.f32 %v852_v34, %v852_v34 }
 0x111   :  { %v979_v41 = vmul.f32 %v851_v35, %v851_v35  ;;  %v2108_v42 = vpop.eup %2107  ;;  %1892 = vst [vmem:[%s3155_s1 + $0x1d8] sm:$0xff] %v1891_v38  ;;  %v1889_v43 = vld [vmem:[#allocation2 + $0x1d0] sm:$0xff]  ;;  %1485 = vst.msk [vmem:[#allocation2 + $0x1f8] sm:$0xff] %vm1421_vm0, %v2106_v37  ;;  %v1301_v44 = vmul.f32 1.442695, %v1105_v36  ;;  %v509_v45 = vpop.permute.xlu1 %508 }
 0x112   :  { %v504_v46 = vpop.permute.xlu0 %503  ;;  %1890 = vst [vmem:[%s3155_s1 + $0x1d0] sm:$0xff] %v1889_v43  ;;  %1484 = vst.msk [vmem:[#allocation2 + $0x1f0] sm:$0xff] %vm1421_vm0, %v2108_v42  ;;  %2117 = vpow2.f32 %v1303_v39  ;;  %v1108_v47 = vmul.f32 -48.02, %v980_v40  ;;  %v854_v49 = vsub.f32 %v509_v45, %v2440_v4 }
 0x113   :  { %v1107_v48 = vmul.f32 -48.02, %v979_v41  ;;  %2119 = vpow2.f32 %v1301_v44  ;;  %v853_v50 = vsub.f32 %v504_v46, %v2440_v4 }
 0x114   :  { %v2110_v51 = vpop.eup %2109  ;;  %v1895_v52 = vld [vmem:[#allocation2 + $0x1e8] sm:$0xff]  ;;  %v1307_v53 = vmul.f32 1.442695, %v1108_v47  ;;  %v982_v55 = vmul.f32 %v854_v49, %v854_v49 }
 0x115   :  { %v1305_v54 = vmul.f32 1.442695, %v1107_v48  ;;  %v2112_v56 = vpop.eup %2111  ;;  %1896 = vst [vmem:[%s3155_s1 + $0x1e8] sm:$0xff] %v1895_v52  ;;  %v1893_v57 = vld [vmem:[#allocation2 + $0x1e0] sm:$0xff]  ;;  %1487 = vst.msk [vmem:[#allocation2 + $0x208] sm:$0xff] %vm1421_vm0, %v2110_v51  ;;  %v981_v58 = vmul.f32 %v853_v50, %v853_v50  ;;  %v519_v59 = vpop.permute.xlu1 %518 }
 0x116   :  { %v514_v60 = vpop.permute.xlu0 %513  ;;  %1894 = vst [vmem:[%s3155_s1 + $0x1e0] sm:$0xff] %v1893_v57  ;;  %1486 = vst.msk [vmem:[#allocation2 + $0x200] sm:$0xff] %vm1421_vm0, %v2112_v56  ;;  %2121 = vpow2.f32 %v1307_v53  ;;  %v1110_v61 = vmul.f32 -48.02, %v982_v55  ;;  %v856_v62 = vsub.f32 %v519_v59, %v2440_v4 }
 0x117   :  { %v855_v63 = vsub.f32 %v514_v60, %v2440_v4  ;;  %2123 = vpow2.f32 %v1305_v54  ;;  %v1109_v0 = vmul.f32 -48.02, %v981_v58 }
 0x118   :  { %v2114_v1 = vpop.eup %2113  ;;  %v1899_v2 = vld [vmem:[#allocation2 + $0x1f8] sm:$0xff]  ;;  %v1311_v3 = vmul.f32 1.442695, %v1110_v61  ;;  %v984_v5 = vmul.f32 %v856_v62, %v856_v62 }
 0x119   :  { %v983_v6 = vmul.f32 %v855_v63, %v855_v63  ;;  %v2116_v7 = vpop.eup %2115  ;;  %1900 = vst [vmem:[%s3155_s1 + $0x1f8] sm:$0xff] %v1899_v2  ;;  %v1897_v8 = vld [vmem:[#allocation2 + $0x1f0] sm:$0xff]  ;;  %1489 = vst.msk [vmem:[#allocation2 + $0x218] sm:$0xff] %vm1421_vm0, %v2114_v1  ;;  %v1309_v9 = vmul.f32 1.442695, %v1109_v0  ;;  %v529_v10 = vpop.permute.xlu1 %528 }
 0x11a   :  { %v524_v11 = vpop.permute.xlu0 %523  ;;  %1898 = vst [vmem:[%s3155_s1 + $0x1f0] sm:$0xff] %v1897_v8  ;;  %1488 = vst.msk [vmem:[#allocation2 + $0x210] sm:$0xff] %vm1421_vm0, %v2116_v7  ;;  %2125 = vpow2.f32 %v1311_v3  ;;  %v1112_v12 = vmul.f32 -48.02, %v984_v5  ;;  %v858_v14 = vsub.f32 %v529_v10, %v2440_v4 }
 0x11b   :  { %v1111_v13 = vmul.f32 -48.02, %v983_v6  ;;  %2127 = vpow2.f32 %v1309_v9  ;;  %v857_v15 = vsub.f32 %v524_v11, %v2440_v4 }
 0x11c   :  { %v2118_v16 = vpop.eup %2117  ;;  %v1903_v17 = vld [vmem:[#allocation2 + $0x208] sm:$0xff]  ;;  %v1315_v18 = vmul.f32 1.442695, %v1112_v12  ;;  %v986_v20 = vmul.f32 %v858_v14, %v858_v14 }
 0x11d   :  { %v1313_v19 = vmul.f32 1.442695, %v1111_v13  ;;  %v2120_v21 = vpop.eup %2119  ;;  %1904 = vst [vmem:[%s3155_s1 + $0x208] sm:$0xff] %v1903_v17  ;;  %v1901_v22 = vld [vmem:[#allocation2 + $0x200] sm:$0xff]  ;;  %1491 = vst.msk [vmem:[#allocation2 + $0x228] sm:$0xff] %vm1421_vm0, %v2118_v16  ;;  %v985_v23 = vmul.f32 %v857_v15, %v857_v15  ;;  %v539_v24 = vpop.permute.xlu1 %538 }
 0x11e   :  { %v534_v25 = vpop.permute.xlu0 %533  ;;  %1902 = vst [vmem:[%s3155_s1 + $0x200] sm:$0xff] %v1901_v22  ;;  %1490 = vst.msk [vmem:[#allocation2 + $0x220] sm:$0xff] %vm1421_vm0, %v2120_v21  ;;  %2129 = vpow2.f32 %v1315_v18  ;;  %v1114_v26 = vmul.f32 -48.02, %v986_v20  ;;  %v860_v27 = vsub.f32 %v539_v24, %v2440_v4 }
 0x11f   :  { %v859_v28 = vsub.f32 %v534_v25, %v2440_v4  ;;  %2131 = vpow2.f32 %v1313_v19  ;;  %v1113_v29 = vmul.f32 -48.02, %v985_v23 }
 0x120   :  { %v2122_v30 = vpop.eup %2121  ;;  %v1907_v31 = vld [vmem:[#allocation2 + $0x218] sm:$0xff]  ;;  %v1319_v32 = vmul.f32 1.442695, %v1114_v26  ;;  %v988_v33 = vmul.f32 %v860_v27, %v860_v27 }
 0x121   :  { %v987_v34 = vmul.f32 %v859_v28, %v859_v28  ;;  %v2124_v35 = vpop.eup %2123  ;;  %1908 = vst [vmem:[%s3155_s1 + $0x218] sm:$0xff] %v1907_v31  ;;  %v1905_v36 = vld [vmem:[#allocation2 + $0x210] sm:$0xff]  ;;  %1493 = vst.msk [vmem:[#allocation2 + $0x238] sm:$0xff] %vm1421_vm0, %v2122_v30  ;;  %v1317_v37 = vmul.f32 1.442695, %v1113_v29  ;;  %v549_v38 = vpop.permute.xlu1 %548 }
 0x122   :  { %v544_v39 = vpop.permute.xlu0 %543  ;;  %1906 = vst [vmem:[%s3155_s1 + $0x210] sm:$0xff] %v1905_v36  ;;  %1492 = vst.msk [vmem:[#allocation2 + $0x230] sm:$0xff] %vm1421_vm0, %v2124_v35  ;;  %2133 = vpow2.f32 %v1319_v32  ;;  %v1116_v40 = vmul.f32 -48.02, %v988_v33  ;;  %v862_v42 = vsub.f32 %v549_v38, %v2440_v4 }
 0x123   :  { %v1115_v41 = vmul.f32 -48.02, %v987_v34  ;;  %2135 = vpow2.f32 %v1317_v37  ;;  %v861_v43 = vsub.f32 %v544_v39, %v2440_v4 }
 0x124   :  { %v2126_v44 = vpop.eup %2125  ;;  %v1911_v45 = vld [vmem:[#allocation2 + $0x228] sm:$0xff]  ;;  %v1323_v46 = vmul.f32 1.442695, %v1116_v40  ;;  %v990_v48 = vmul.f32 %v862_v42, %v862_v42 }
 0x125   :  { %v1321_v47 = vmul.f32 1.442695, %v1115_v41  ;;  %v2128_v49 = vpop.eup %2127  ;;  %1912 = vst [vmem:[%s3155_s1 + $0x228] sm:$0xff] %v1911_v45  ;;  %v1909_v50 = vld [vmem:[#allocation2 + $0x220] sm:$0xff]  ;;  %1495 = vst.msk [vmem:[#allocation2 + $0x248] sm:$0xff] %vm1421_vm0, %v2126_v44  ;;  %v989_v51 = vmul.f32 %v861_v43, %v861_v43  ;;  %v559_v52 = vpop.permute.xlu1 %558 }
 0x126   :  { %v554_v53 = vpop.permute.xlu0 %553  ;;  %1910 = vst [vmem:[%s3155_s1 + $0x220] sm:$0xff] %v1909_v50  ;;  %1494 = vst.msk [vmem:[#allocation2 + $0x240] sm:$0xff] %vm1421_vm0, %v2128_v49  ;;  %2137 = vpow2.f32 %v1323_v46  ;;  %v1118_v54 = vmul.f32 -48.02, %v990_v48  ;;  %v864_v55 = vsub.f32 %v559_v52, %v2440_v4 }
 0x127   :  { %v863_v56 = vsub.f32 %v554_v53, %v2440_v4  ;;  %2139 = vpow2.f32 %v1321_v47  ;;  %v1117_v57 = vmul.f32 -48.02, %v989_v51 }
 0x128   :  { %v2130_v58 = vpop.eup %2129  ;;  %v1915_v59 = vld [vmem:[#allocation2 + $0x238] sm:$0xff]  ;;  %v1327_v60 = vmul.f32 1.442695, %v1118_v54  ;;  %v992_v61 = vmul.f32 %v864_v55, %v864_v55 }
 0x129   :  { %v991_v62 = vmul.f32 %v863_v56, %v863_v56  ;;  %v2132_v63 = vpop.eup %2131  ;;  %1916 = vst [vmem:[%s3155_s1 + $0x238] sm:$0xff] %v1915_v59  ;;  %v1913_v0 = vld [vmem:[#allocation2 + $0x230] sm:$0xff]  ;;  %1497 = vst.msk [vmem:[#allocation2 + $0x258] sm:$0xff] %vm1421_vm0, %v2130_v58  ;;  %v1325_v1 = vmul.f32 1.442695, %v1117_v57  ;;  %v569_v2 = vpop.permute.xlu1 %568 }
 0x12a   :  { %v564_v3 = vpop.permute.xlu0 %563  ;;  %1914 = vst [vmem:[%s3155_s1 + $0x230] sm:$0xff] %v1913_v0  ;;  %1496 = vst.msk [vmem:[#allocation2 + $0x250] sm:$0xff] %vm1421_vm0, %v2132_v63  ;;  %2141 = vpow2.f32 %v1327_v60  ;;  %v1120_v5 = vmul.f32 -48.02, %v992_v61  ;;  %v866_v7 = vsub.f32 %v569_v2, %v2440_v4 }
 0x12b   :  { %v1119_v6 = vmul.f32 -48.02, %v991_v62  ;;  %2143 = vpow2.f32 %v1325_v1  ;;  %v865_v8 = vsub.f32 %v564_v3, %v2440_v4 }
 0x12c   :  { %v2134_v9 = vpop.eup %2133  ;;  %v1919_v10 = vld [vmem:[#allocation2 + $0x248] sm:$0xff]  ;;  %v1331_v11 = vmul.f32 1.442695, %v1120_v5  ;;  %v994_v13 = vmul.f32 %v866_v7, %v866_v7 }
 0x12d   :  { %v1329_v12 = vmul.f32 1.442695, %v1119_v6  ;;  %v2136_v14 = vpop.eup %2135  ;;  %1920 = vst [vmem:[%s3155_s1 + $0x248] sm:$0xff] %v1919_v10  ;;  %v1917_v15 = vld [vmem:[#allocation2 + $0x240] sm:$0xff]  ;;  %1499 = vst.msk [vmem:[#allocation2 + $0x268] sm:$0xff] %vm1421_vm0, %v2134_v9  ;;  %v993_v16 = vmul.f32 %v865_v8, %v865_v8  ;;  %v579_v17 = vpop.permute.xlu1 %578 }
 0x12e   :  { %v574_v18 = vpop.permute.xlu0 %573  ;;  %1918 = vst [vmem:[%s3155_s1 + $0x240] sm:$0xff] %v1917_v15  ;;  %1498 = vst.msk [vmem:[#allocation2 + $0x260] sm:$0xff] %vm1421_vm0, %v2136_v14  ;;  %2145 = vpow2.f32 %v1331_v11  ;;  %v1122_v19 = vmul.f32 -48.02, %v994_v13  ;;  %v868_v20 = vsub.f32 %v579_v17, %v2440_v4 }
 0x12f   :  { %v867_v21 = vsub.f32 %v574_v18, %v2440_v4  ;;  %2147 = vpow2.f32 %v1329_v12  ;;  %v1121_v22 = vmul.f32 -48.02, %v993_v16 }
 0x130   :  { %v2138_v23 = vpop.eup %2137  ;;  %v1923_v24 = vld [vmem:[#allocation2 + $0x258] sm:$0xff]  ;;  %v1335_v25 = vmul.f32 1.442695, %v1122_v19  ;;  %v996_v26 = vmul.f32 %v868_v20, %v868_v20 }
 0x131   :  { %v995_v27 = vmul.f32 %v867_v21, %v867_v21  ;;  %v2140_v28 = vpop.eup %2139  ;;  %1924 = vst [vmem:[%s3155_s1 + $0x258] sm:$0xff] %v1923_v24  ;;  %v1921_v29 = vld [vmem:[#allocation2 + $0x250] sm:$0xff]  ;;  %1501 = vst.msk [vmem:[#allocation2 + $0x278] sm:$0xff] %vm1421_vm0, %v2138_v23  ;;  %v1333_v30 = vmul.f32 1.442695, %v1121_v22  ;;  %v589_v31 = vpop.permute.xlu1 %588 }
 0x132   :  { %v584_v32 = vpop.permute.xlu0 %583  ;;  %1922 = vst [vmem:[%s3155_s1 + $0x250] sm:$0xff] %v1921_v29  ;;  %1500 = vst.msk [vmem:[#allocation2 + $0x270] sm:$0xff] %vm1421_vm0, %v2140_v28  ;;  %2149 = vpow2.f32 %v1335_v25  ;;  %v1124_v33 = vmul.f32 -48.02, %v996_v26  ;;  %v870_v35 = vsub.f32 %v589_v31, %v2440_v4 }
 0x133   :  { %v1123_v34 = vmul.f32 -48.02, %v995_v27  ;;  %2151 = vpow2.f32 %v1333_v30  ;;  %v869_v36 = vsub.f32 %v584_v32, %v2440_v4 }
 0x134   :  { %v2142_v37 = vpop.eup %2141  ;;  %v1927_v38 = vld [vmem:[#allocation2 + $0x268] sm:$0xff]  ;;  %v1339_v39 = vmul.f32 1.442695, %v1124_v33  ;;  %v998_v41 = vmul.f32 %v870_v35, %v870_v35 }
 0x135   :  { %v1337_v40 = vmul.f32 1.442695, %v1123_v34  ;;  %v2144_v42 = vpop.eup %2143  ;;  %1928 = vst [vmem:[%s3155_s1 + $0x268] sm:$0xff] %v1927_v38  ;;  %v1925_v43 = vld [vmem:[#allocation2 + $0x260] sm:$0xff]  ;;  %1503 = vst.msk [vmem:[#allocation2 + $0x288] sm:$0xff] %vm1421_vm0, %v2142_v37  ;;  %v997_v44 = vmul.f32 %v869_v36, %v869_v36  ;;  %v599_v45 = vpop.permute.xlu1 %598 }
 0x136   :  { %v594_v46 = vpop.permute.xlu0 %593  ;;  %1926 = vst [vmem:[%s3155_s1 + $0x260] sm:$0xff] %v1925_v43  ;;  %1502 = vst.msk [vmem:[#allocation2 + $0x280] sm:$0xff] %vm1421_vm0, %v2144_v42  ;;  %2153 = vpow2.f32 %v1339_v39  ;;  %v1126_v47 = vmul.f32 -48.02, %v998_v41  ;;  %v872_v48 = vsub.f32 %v599_v45, %v2440_v4 }
 0x137   :  { %v871_v49 = vsub.f32 %v594_v46, %v2440_v4  ;;  %2155 = vpow2.f32 %v1337_v40  ;;  %v1125_v50 = vmul.f32 -48.02, %v997_v44 }
 0x138   :  { %v2146_v51 = vpop.eup %2145  ;;  %v1931_v52 = vld [vmem:[#allocation2 + $0x278] sm:$0xff]  ;;  %v1343_v53 = vmul.f32 1.442695, %v1126_v47  ;;  %v1000_v54 = vmul.f32 %v872_v48, %v872_v48 }
 0x139   :  { %v999_v55 = vmul.f32 %v871_v49, %v871_v49  ;;  %v2148_v56 = vpop.eup %2147  ;;  %1932 = vst [vmem:[%s3155_s1 + $0x278] sm:$0xff] %v1931_v52  ;;  %v1929_v57 = vld [vmem:[#allocation2 + $0x270] sm:$0xff]  ;;  %1505 = vst.msk [vmem:[#allocation2 + $0x298] sm:$0xff] %vm1421_vm0, %v2146_v51  ;;  %v1341_v58 = vmul.f32 1.442695, %v1125_v50  ;;  %v609_v59 = vpop.permute.xlu1 %608 }
 0x13a   :  { %v604_v60 = vpop.permute.xlu0 %603  ;;  %1930 = vst [vmem:[%s3155_s1 + $0x270] sm:$0xff] %v1929_v57  ;;  %1504 = vst.msk [vmem:[#allocation2 + $0x290] sm:$0xff] %vm1421_vm0, %v2148_v56  ;;  %2157 = vpow2.f32 %v1343_v53  ;;  %v1128_v61 = vmul.f32 -48.02, %v1000_v54  ;;  %v874_v63 = vsub.f32 %v609_v59, %v2440_v4 }
 0x13b   :  { %v1127_v62 = vmul.f32 -48.02, %v999_v55  ;;  %2159 = vpow2.f32 %v1341_v58  ;;  %v873_v0 = vsub.f32 %v604_v60, %v2440_v4 }
 0x13c   :  { %v2150_v1 = vpop.eup %2149  ;;  %v1935_v2 = vld [vmem:[#allocation2 + $0x288] sm:$0xff]  ;;  %v1347_v3 = vmul.f32 1.442695, %v1128_v61  ;;  %v1002_v6 = vmul.f32 %v874_v63, %v874_v63 }
 0x13d   :  { %v1345_v5 = vmul.f32 1.442695, %v1127_v62  ;;  %v2152_v7 = vpop.eup %2151  ;;  %1936 = vst [vmem:[%s3155_s1 + $0x288] sm:$0xff] %v1935_v2  ;;  %v1933_v8 = vld [vmem:[#allocation2 + $0x280] sm:$0xff]  ;;  %1507 = vst.msk [vmem:[#allocation2 + $0x2a8] sm:$0xff] %vm1421_vm0, %v2150_v1  ;;  %v1001_v9 = vmul.f32 %v873_v0, %v873_v0  ;;  %v619_v10 = vpop.permute.xlu1 %618 }
 0x13e   :  { %v614_v11 = vpop.permute.xlu0 %613  ;;  %1934 = vst [vmem:[%s3155_s1 + $0x280] sm:$0xff] %v1933_v8  ;;  %1506 = vst.msk [vmem:[#allocation2 + $0x2a0] sm:$0xff] %vm1421_vm0, %v2152_v7  ;;  %2161 = vpow2.f32 %v1347_v3  ;;  %v1130_v12 = vmul.f32 -48.02, %v1002_v6  ;;  %v876_v13 = vsub.f32 %v619_v10, %v2440_v4 }
 0x13f   :  { %v875_v14 = vsub.f32 %v614_v11, %v2440_v4  ;;  %2163 = vpow2.f32 %v1345_v5  ;;  %v1129_v15 = vmul.f32 -48.02, %v1001_v9 }
 0x140   :  { %v2154_v16 = vpop.eup %2153  ;;  %v1939_v17 = vld [vmem:[#allocation2 + $0x298] sm:$0xff]  ;;  %v1351_v18 = vmul.f32 1.442695, %v1130_v12  ;;  %v1004_v19 = vmul.f32 %v876_v13, %v876_v13 }
 0x141   :  { %v1003_v20 = vmul.f32 %v875_v14, %v875_v14  ;;  %v2156_v21 = vpop.eup %2155  ;;  %1940 = vst [vmem:[%s3155_s1 + $0x298] sm:$0xff] %v1939_v17  ;;  %v1937_v22 = vld [vmem:[#allocation2 + $0x290] sm:$0xff]  ;;  %1509 = vst.msk [vmem:[#allocation2 + $0x2b8] sm:$0xff] %vm1421_vm0, %v2154_v16  ;;  %v1349_v23 = vmul.f32 1.442695, %v1129_v15  ;;  %v629_v24 = vpop.permute.xlu1 %628 }
 0x142   :  { %v624_v25 = vpop.permute.xlu0 %623  ;;  %1938 = vst [vmem:[%s3155_s1 + $0x290] sm:$0xff] %v1937_v22  ;;  %1508 = vst.msk [vmem:[#allocation2 + $0x2b0] sm:$0xff] %vm1421_vm0, %v2156_v21  ;;  %2165 = vpow2.f32 %v1351_v18  ;;  %v1132_v26 = vmul.f32 -48.02, %v1004_v19  ;;  %v878_v28 = vsub.f32 %v629_v24, %v2440_v4 }
 0x143   :  { %v1131_v27 = vmul.f32 -48.02, %v1003_v20  ;;  %2167 = vpow2.f32 %v1349_v23  ;;  %v877_v29 = vsub.f32 %v624_v25, %v2440_v4 }
 0x144   :  { %v2158_v30 = vpop.eup %2157  ;;  %v1943_v31 = vld [vmem:[#allocation2 + $0x2a8] sm:$0xff]  ;;  %v1355_v32 = vmul.f32 1.442695, %v1132_v26  ;;  %v1006_v34 = vmul.f32 %v878_v28, %v878_v28 }
 0x145   :  { %v1353_v33 = vmul.f32 1.442695, %v1131_v27  ;;  %v2160_v35 = vpop.eup %2159  ;;  %1944 = vst [vmem:[%s3155_s1 + $0x2a8] sm:$0xff] %v1943_v31  ;;  %v1941_v36 = vld [vmem:[#allocation2 + $0x2a0] sm:$0xff]  ;;  %1511 = vst.msk [vmem:[#allocation2 + $0x2c8] sm:$0xff] %vm1421_vm0, %v2158_v30  ;;  %v1005_v37 = vmul.f32 %v877_v29, %v877_v29  ;;  %v639_v38 = vpop.permute.xlu1 %638 }
 0x146   :  { %v634_v39 = vpop.permute.xlu0 %633  ;;  %1942 = vst [vmem:[%s3155_s1 + $0x2a0] sm:$0xff] %v1941_v36  ;;  %1510 = vst.msk [vmem:[#allocation2 + $0x2c0] sm:$0xff] %vm1421_vm0, %v2160_v35  ;;  %2169 = vpow2.f32 %v1355_v32  ;;  %v1134_v40 = vmul.f32 -48.02, %v1006_v34  ;;  %v880_v41 = vsub.f32 %v639_v38, %v2440_v4 }
 0x147   :  { %v879_v42 = vsub.f32 %v634_v39, %v2440_v4  ;;  %2171 = vpow2.f32 %v1353_v33  ;;  %v1133_v43 = vmul.f32 -48.02, %v1005_v37 }
 0x148   :  { %v2162_v44 = vpop.eup %2161  ;;  %v1947_v45 = vld [vmem:[#allocation2 + $0x2b8] sm:$0xff]  ;;  %v1359_v46 = vmul.f32 1.442695, %v1134_v40  ;;  %v1008_v47 = vmul.f32 %v880_v41, %v880_v41 }
 0x149   :  { %v1007_v48 = vmul.f32 %v879_v42, %v879_v42  ;;  %v2164_v49 = vpop.eup %2163  ;;  %1948 = vst [vmem:[%s3155_s1 + $0x2b8] sm:$0xff] %v1947_v45  ;;  %v1945_v50 = vld [vmem:[#allocation2 + $0x2b0] sm:$0xff]  ;;  %1513 = vst.msk [vmem:[#allocation2 + $0x2d8] sm:$0xff] %vm1421_vm0, %v2162_v44  ;;  %v1357_v51 = vmul.f32 1.442695, %v1133_v43  ;;  %v649_v52 = vpop.permute.xlu1 %648 }
 0x14a   :  { %v644_v53 = vpop.permute.xlu0 %643  ;;  %1946 = vst [vmem:[%s3155_s1 + $0x2b0] sm:$0xff] %v1945_v50  ;;  %1512 = vst.msk [vmem:[#allocation2 + $0x2d0] sm:$0xff] %vm1421_vm0, %v2164_v49  ;;  %2173 = vpow2.f32 %v1359_v46  ;;  %v1136_v54 = vmul.f32 -48.02, %v1008_v47  ;;  %v882_v56 = vsub.f32 %v649_v52, %v2440_v4 }
 0x14b   :  { %v1135_v55 = vmul.f32 -48.02, %v1007_v48  ;;  %2175 = vpow2.f32 %v1357_v51  ;;  %v881_v57 = vsub.f32 %v644_v53, %v2440_v4 }
 0x14c   :  { %v2166_v58 = vpop.eup %2165  ;;  %v1951_v59 = vld [vmem:[#allocation2 + $0x2c8] sm:$0xff]  ;;  %v1363_v60 = vmul.f32 1.442695, %v1136_v54  ;;  %v1010_v62 = vmul.f32 %v882_v56, %v882_v56 }
 0x14d   :  { %v1361_v61 = vmul.f32 1.442695, %v1135_v55  ;;  %v2168_v63 = vpop.eup %2167  ;;  %1952 = vst [vmem:[%s3155_s1 + $0x2c8] sm:$0xff] %v1951_v59  ;;  %v1949_v0 = vld [vmem:[#allocation2 + $0x2c0] sm:$0xff]  ;;  %1515 = vst.msk [vmem:[#allocation2 + $0x2e8] sm:$0xff] %vm1421_vm0, %v2166_v58  ;;  %v1009_v1 = vmul.f32 %v881_v57, %v881_v57  ;;  %v659_v2 = vpop.permute.xlu1 %658 }
 0x14e   :  { %v654_v3 = vpop.permute.xlu0 %653  ;;  %1950 = vst [vmem:[%s3155_s1 + $0x2c0] sm:$0xff] %v1949_v0  ;;  %1514 = vst.msk [vmem:[#allocation2 + $0x2e0] sm:$0xff] %vm1421_vm0, %v2168_v63  ;;  %2177 = vpow2.f32 %v1363_v60  ;;  %v1138_v5 = vmul.f32 -48.02, %v1010_v62  ;;  %v884_v6 = vsub.f32 %v659_v2, %v2440_v4 }
 0x14f   :  { %v883_v7 = vsub.f32 %v654_v3, %v2440_v4  ;;  %2179 = vpow2.f32 %v1361_v61  ;;  %v1137_v8 = vmul.f32 -48.02, %v1009_v1 }
 0x150   :  { %v2170_v9 = vpop.eup %2169  ;;  %v1955_v10 = vld [vmem:[#allocation2 + $0x2d8] sm:$0xff]  ;;  %v1367_v11 = vmul.f32 1.442695, %v1138_v5  ;;  %v1012_v12 = vmul.f32 %v884_v6, %v884_v6 }
 0x151   :  { %v1011_v13 = vmul.f32 %v883_v7, %v883_v7  ;;  %v2172_v14 = vpop.eup %2171  ;;  %1956 = vst [vmem:[%s3155_s1 + $0x2d8] sm:$0xff] %v1955_v10  ;;  %v1953_v15 = vld [vmem:[#allocation2 + $0x2d0] sm:$0xff]  ;;  %1517 = vst.msk [vmem:[#allocation2 + $0x2f8] sm:$0xff] %vm1421_vm0, %v2170_v9  ;;  %v1365_v16 = vmul.f32 1.442695, %v1137_v8  ;;  %v669_v17 = vpop.permute.xlu1 %668 }
 0x152   :  { %v664_v18 = vpop.permute.xlu0 %663  ;;  %1954 = vst [vmem:[%s3155_s1 + $0x2d0] sm:$0xff] %v1953_v15  ;;  %1516 = vst.msk [vmem:[#allocation2 + $0x2f0] sm:$0xff] %vm1421_vm0, %v2172_v14  ;;  %2181 = vpow2.f32 %v1367_v11  ;;  %v1140_v19 = vmul.f32 -48.02, %v1012_v12  ;;  %v886_v21 = vsub.f32 %v669_v17, %v2440_v4 }
 0x153   :  { %v1139_v20 = vmul.f32 -48.02, %v1011_v13  ;;  %2183 = vpow2.f32 %v1365_v16  ;;  %v885_v22 = vsub.f32 %v664_v18, %v2440_v4 }
 0x154   :  { %v2174_v23 = vpop.eup %2173  ;;  %v1959_v24 = vld [vmem:[#allocation2 + $0x2e8] sm:$0xff]  ;;  %v1371_v25 = vmul.f32 1.442695, %v1140_v19  ;;  %v1014_v27 = vmul.f32 %v886_v21, %v886_v21 }
 0x155   :  { %v1369_v26 = vmul.f32 1.442695, %v1139_v20  ;;  %v2176_v28 = vpop.eup %2175  ;;  %1960 = vst [vmem:[%s3155_s1 + $0x2e8] sm:$0xff] %v1959_v24  ;;  %v1957_v29 = vld [vmem:[#allocation2 + $0x2e0] sm:$0xff]  ;;  %1519 = vst.msk [vmem:[#allocation2 + $0x308] sm:$0xff] %vm1421_vm0, %v2174_v23  ;;  %v1013_v30 = vmul.f32 %v885_v22, %v885_v22  ;;  %v679_v31 = vpop.permute.xlu1 %678 }
 0x156   :  { %v674_v32 = vpop.permute.xlu0 %673  ;;  %1958 = vst [vmem:[%s3155_s1 + $0x2e0] sm:$0xff] %v1957_v29  ;;  %1518 = vst.msk [vmem:[#allocation2 + $0x300] sm:$0xff] %vm1421_vm0, %v2176_v28  ;;  %2185 = vpow2.f32 %v1371_v25  ;;  %v1142_v33 = vmul.f32 -48.02, %v1014_v27  ;;  %v888_v34 = vsub.f32 %v679_v31, %v2440_v4 }
 0x157   :  { %v887_v35 = vsub.f32 %v674_v32, %v2440_v4  ;;  %2187 = vpow2.f32 %v1369_v26  ;;  %v1141_v36 = vmul.f32 -48.02, %v1013_v30 }
 0x158   :  { %v2178_v37 = vpop.eup %2177  ;;  %v1963_v38 = vld [vmem:[#allocation2 + $0x2f8] sm:$0xff]  ;;  %v1375_v39 = vmul.f32 1.442695, %v1142_v33  ;;  %v1016_v40 = vmul.f32 %v888_v34, %v888_v34 }
 0x159   :  { %v1015_v41 = vmul.f32 %v887_v35, %v887_v35  ;;  %v2180_v42 = vpop.eup %2179  ;;  %1964 = vst [vmem:[%s3155_s1 + $0x2f8] sm:$0xff] %v1963_v38  ;;  %v1961_v43 = vld [vmem:[#allocation2 + $0x2f0] sm:$0xff]  ;;  %v1373_v44 = vmul.f32 1.442695, %v1141_v36  ;;  %v689_v45 = vpop.permute.xlu1 %688 }
 0x15a   :  { %v684_v46 = vpop.permute.xlu0 %683  ;;  %1962 = vst [vmem:[%s3155_s1 + $0x2f0] sm:$0xff] %v1961_v43  ;;  %2189 = vpow2.f32 %v1375_v39  ;;  %v1144_v47 = vmul.f32 -48.02, %v1016_v40  ;;  %v890_v49 = vsub.f32 %v689_v45, %v2440_v4 }
 0x15b   :  { %v1143_v48 = vmul.f32 -48.02, %v1015_v41  ;;  %2191 = vpow2.f32 %v1373_v44  ;;  %v889_v50 = vsub.f32 %v684_v46, %v2440_v4 }
 0x15c   :  { %v2182_v51 = vpop.eup %2181  ;;  %v1967_v52 = vld [vmem:[#allocation2 + $0x308] sm:$0xff]  ;;  %v1379_v53 = vmul.f32 1.442695, %v1144_v47  ;;  %v1018_v55 = vmul.f32 %v890_v49, %v890_v49 }
 0x15d   :  { %v1377_v54 = vmul.f32 1.442695, %v1143_v48  ;;  %v2184_v56 = vpop.eup %2183  ;;  %1968 = vst [vmem:[%s3155_s1 + $0x308] sm:$0xff] %v1967_v52  ;;  %v1965_v57 = vld [vmem:[#allocation2 + $0x300] sm:$0xff]  ;;  %v1017_v58 = vmul.f32 %v889_v50, %v889_v50  ;;  %v699_v59 = vpop.permute.xlu1 %698 }
 0x15e   :  { %v694_v60 = vpop.permute.xlu0 %693  ;;  %1966 = vst [vmem:[%s3155_s1 + $0x300] sm:$0xff] %v1965_v57  ;;  %2193 = vpow2.f32 %v1379_v53  ;;  %v1146_v61 = vmul.f32 -48.02, %v1018_v55  ;;  %v892_v62 = vsub.f32 %v699_v59, %v2440_v4 }
 0x15f   :  { %v891_v63 = vsub.f32 %v694_v60, %v2440_v4  ;;  %2195 = vpow2.f32 %v1377_v54  ;;  %v1145_v0 = vmul.f32 -48.02, %v1017_v58 }
 0x160   :  { %v2186_v1 = vpop.eup %2185  ;;  %v1383_v2 = vmul.f32 1.442695, %v1146_v61  ;;  %v1020_v3 = vmul.f32 %v892_v62, %v892_v62 }
 0x161   :  { %v1019_v5 = vmul.f32 %v891_v63, %v891_v63  ;;  %v2188_v6 = vpop.eup %2187  ;;  %v1381_v7 = vmul.f32 1.442695, %v1145_v0  ;;  %v709_v8 = vpop.permute.xlu1 %708 }
 0x162   :  { %v704_v9 = vpop.permute.xlu0 %703  ;;  %2197 = vpow2.f32 %v1383_v2  ;;  %v1148_v10 = vmul.f32 -48.02, %v1020_v3  ;;  %v894_v12 = vsub.f32 %v709_v8, %v2440_v4 }
 0x163   :  { %v1147_v11 = vmul.f32 -48.02, %v1019_v5  ;;  %2199 = vpow2.f32 %v1381_v7  ;;  %v893_v13 = vsub.f32 %v704_v9, %v2440_v4 }
 0x164   :  { %v2190_v14 = vpop.eup %2189  ;;  %v1387_v15 = vmul.f32 1.442695, %v1148_v10  ;;  %v1022_v17 = vmul.f32 %v894_v12, %v894_v12 }
 0x165   :  { %v1385_v16 = vmul.f32 1.442695, %v1147_v11  ;;  %v2192_v18 = vpop.eup %2191  ;;  %v1021_v19 = vmul.f32 %v893_v13, %v893_v13  ;;  %v719_v20 = vpop.permute.xlu1 %718 }
 0x166   :  { %v714_v21 = vpop.permute.xlu0 %713  ;;  %2201 = vpow2.f32 %v1387_v15  ;;  %v1150_v22 = vmul.f32 -48.02, %v1022_v17  ;;  %v896_v23 = vsub.f32 %v719_v20, %v2440_v4 }
 0x167   :  { %v895_v24 = vsub.f32 %v714_v21, %v2440_v4  ;;  %2203 = vpow2.f32 %v1385_v16  ;;  %v1149_v25 = vmul.f32 -48.02, %v1021_v19 }
 0x168   :  { %v2194_v26 = vpop.eup %2193  ;;  %v1391_v27 = vmul.f32 1.442695, %v1150_v22  ;;  %v1024_v28 = vmul.f32 %v896_v23, %v896_v23 }
 0x169   :  { %v1023_v29 = vmul.f32 %v895_v24, %v895_v24  ;;  %v2196_v30 = vpop.eup %2195  ;;  %v1389_v31 = vmul.f32 1.442695, %v1149_v25  ;;  %v729_v32 = vpop.permute.xlu1 %728 }
 0x16a   :  { %v724_v33 = vpop.permute.xlu0 %723  ;;  %2205 = vpow2.f32 %v1391_v27  ;;  %v1152_v34 = vmul.f32 -48.02, %v1024_v28  ;;  %v898_v36 = vsub.f32 %v729_v32, %v2440_v4 }
 0x16b   :  { %v1151_v35 = vmul.f32 -48.02, %v1023_v29  ;;  %2207 = vpow2.f32 %v1389_v31  ;;  %v897_v37 = vsub.f32 %v724_v33, %v2440_v4 }
 0x16c   :  { %v2198_v38 = vpop.eup %2197  ;;  %v1395_v39 = vmul.f32 1.442695, %v1152_v34  ;;  %v1026_v41 = vmul.f32 %v898_v36, %v898_v36 }
 0x16d   :  { %v1393_v40 = vmul.f32 1.442695, %v1151_v35  ;;  %v2200_v42 = vpop.eup %2199  ;;  %v1025_v43 = vmul.f32 %v897_v37, %v897_v37  ;;  %v739_v44 = vpop.permute.xlu1 %738 }
 0x16e   :  { %v734_v45 = vpop.permute.xlu0 %733  ;;  %2209 = vpow2.f32 %v1395_v39  ;;  %v1154_v46 = vmul.f32 -48.02, %v1026_v41  ;;  %v900_v47 = vsub.f32 %v739_v44, %v2440_v4 }
 0x16f   :  { %v899_v48 = vsub.f32 %v734_v45, %v2440_v4  ;;  %2211 = vpow2.f32 %v1393_v40  ;;  %v1153_v49 = vmul.f32 -48.02, %v1025_v43 }
 0x170   :  { %v2202_v50 = vpop.eup %2201  ;;  %v1399_v51 = vmul.f32 1.442695, %v1154_v46  ;;  %v1028_v52 = vmul.f32 %v900_v47, %v900_v47 }
 0x171   :  { %v1027_v53 = vmul.f32 %v899_v48, %v899_v48  ;;  %v2204_v54 = vpop.eup %2203  ;;  %v1397_v55 = vmul.f32 1.442695, %v1153_v49  ;;  %v749_v56 = vpop.permute.xlu1 %748 }
 0x172   :  { %v744_v57 = vpop.permute.xlu0 %743  ;;  %2213 = vpow2.f32 %v1399_v51  ;;  %v1156_v58 = vmul.f32 -48.02, %v1028_v52  ;;  %v902_v60 = vsub.f32 %v749_v56, %v2440_v4 }
 0x173   :  { %v1155_v59 = vmul.f32 -48.02, %v1027_v53  ;;  %2215 = vpow2.f32 %v1397_v55  ;;  %v901_v61 = vsub.f32 %v744_v57, %v2440_v4 }
 0x174   :  { %v2206_v62 = vpop.eup %2205  ;;  %v1403_v63 = vmul.f32 1.442695, %v1156_v58  ;;  %v1030_v1 = vmul.f32 %v902_v60, %v902_v60 }
 0x175   :  { %v1401_v0 = vmul.f32 1.442695, %v1155_v59  ;;  %v2208_v2 = vpop.eup %2207  ;;  %v1029_v3 = vmul.f32 %v901_v61, %v901_v61  ;;  %v759_v5 = vpop.permute.xlu1 %758 }
 0x176   :  { %v754_v6 = vpop.permute.xlu0 %753  ;;  %2217 = vpow2.f32 %v1403_v63  ;;  %v1158_v7 = vmul.f32 -48.02, %v1030_v1  ;;  %v904_v8 = vsub.f32 %v759_v5, %v2440_v4 }
 0x177   :  { %v903_v9 = vsub.f32 %v754_v6, %v2440_v4  ;;  %2219 = vpow2.f32 %v1401_v0  ;;  %v1157_v10 = vmul.f32 -48.02, %v1029_v3 }
 0x178   :  { %v2210_v11 = vpop.eup %2209  ;;  %v1407_v12 = vmul.f32 1.442695, %v1158_v7  ;;  %v1032_v13 = vmul.f32 %v904_v8, %v904_v8 }
 0x179   :  { %v1031_v14 = vmul.f32 %v903_v9, %v903_v9  ;;  %v2212_v15 = vpop.eup %2211  ;;  %v1405_v16 = vmul.f32 1.442695, %v1157_v10  ;;  %v769_v17 = vpop.permute.xlu1 %768 }
 0x17a   :  { %v764_v18 = vpop.permute.xlu0 %763  ;;  %2221 = vpow2.f32 %v1407_v12  ;;  %v1160_v19 = vmul.f32 -48.02, %v1032_v13  ;;  %v906_v21 = vsub.f32 %v769_v17, %v2440_v4 }
 0x17b   :  { %v1159_v20 = vmul.f32 -48.02, %v1031_v14  ;;  %2223 = vpow2.f32 %v1405_v16  ;;  %v905_v22 = vsub.f32 %v764_v18, %v2440_v4 }
 0x17c   :  { %v2214_v23 = vpop.eup %2213  ;;  %v1411_v24 = vmul.f32 1.442695, %v1160_v19  ;;  %v1034_v26 = vmul.f32 %v906_v21, %v906_v21 }
 0x17d   :  { %v1409_v25 = vmul.f32 1.442695, %v1159_v20  ;;  %v2216_v27 = vpop.eup %2215  ;;  %v1033_v28 = vmul.f32 %v905_v22, %v905_v22  ;;  %v779_v29 = vpop.permute.xlu1 %778 }
 0x17e   :  { %v774_v30 = vpop.permute.xlu0 %773  ;;  %2225 = vpow2.f32 %v1411_v24  ;;  %v1162_v31 = vmul.f32 -48.02, %v1034_v26  ;;  %v908_v32 = vsub.f32 %v779_v29, %v2440_v4 }
 0x17f   :  { %v907_v33 = vsub.f32 %v774_v30, %v2440_v4  ;;  %2227 = vpow2.f32 %v1409_v25  ;;  %v1161_v34 = vmul.f32 -48.02, %v1033_v28 }
 0x180   :  { %v2218_v35 = vpop.eup %2217  ;;  %v1415_v36 = vmul.f32 1.442695, %v1162_v31  ;;  %v1036_v37 = vmul.f32 %v908_v32, %v908_v32 }
 0x181   :  { %v1035_v38 = vmul.f32 %v907_v33, %v907_v33  ;;  %v2220_v39 = vpop.eup %2219  ;;  %v1413_v40 = vmul.f32 1.442695, %v1161_v34 }
 0x182   :  { %2229 = vpow2.f32 %v1415_v36  ;;  %v1164_v41 = vmul.f32 -48.02, %v1036_v37 }
 0x183   :  { %v1163_v42 = vmul.f32 -48.02, %v1035_v38  ;;  %2231 = vpow2.f32 %v1413_v40 }
 0x184   :  { %v2222_v43 = vpop.eup %2221  ;;  %v1419_v44 = vmul.f32 1.442695, %v1164_v41 }
 0x185   :  { %v1417_v45 = vmul.f32 1.442695, %v1163_v42  ;;  %v2224_v46 = vpop.eup %2223 }
 0x186   :  { %2233 = vpow2.f32 %v1419_v44 }
 0x187   :  { %2235 = vpow2.f32 %v1417_v45 }
 0x188   :  { %v2226_v47 = vpop.eup %2225 }
 0x189   :  { %v2228_v4 = vpop.eup %2227 }
 0x18c   :  { %v2230_v48 = vpop.eup %2229 }
 0x18d   :  { %v2232_v49 = vpop.eup %2231 }
 0x190   :  { %v2234_v50 = vpop.eup %2233 }
 0x191   :  { %v2236_v51 = vpop.eup %2235 }

</bundles_post_ra>
